<compile_context>
chip_gen: v6e
topology: v6e:2x2x1
jax: 0.10.0
libtpu: 0.0.40
codegen_flags: <defaults>
</compile_context>

<pallas_src>
import jax
import jax.numpy as jnp
from jax import lax
from jax.experimental import pallas as pl
from jax.experimental.pallas import tpu as pltpu


def anaxnet_kernel(feat_ref, adjb_ref, w1_ref, w2_ref, gamma_ref, beta_ref,
                   wn_ref, bn_ref, wg_ref, bg_ref, node_ref, graph_ref):
    Bt, N, C = feat_ref.shape
    H = w1_ref.shape[1]
    KP = wn_ref.shape[1]
    R = Bt * N

    # Hoisted loads (once per grid step).
    f3 = feat_ref[...]                                    # (Bt, N, C) f32
    f2_bf = f3.reshape(R, C).astype(jnp.bfloat16)         # free view + cast for MXU
    adjb = adjb_ref[...]                                  # (R, R) bf16 block-diag adj
    gamma = gamma_ref[0]                                  # (C,)
    beta = beta_ref[0]                                    # (C,)
    bn = bn_ref[0]                                        # (KP,)
    bg = bg_ref[0]                                        # (KP,)

    # --- GraphConvolution 1 + LeakyReLU(0.2) --- (bf16 operands, f32 accumulation)
    s1 = jnp.dot(f2_bf, w1_ref[...], preferred_element_type=jnp.float32)        # (R, H)
    x1 = jnp.dot(adjb, s1.astype(jnp.bfloat16),
                 preferred_element_type=jnp.float32)                            # (R, H)
    x1 = jnp.where(x1 > 0, x1, 0.2 * x1)                                        # f32 VPU

    # --- GraphConvolution 2 ---
    s2 = jnp.dot(x1.astype(jnp.bfloat16), w2_ref[...],
                 preferred_element_type=jnp.float32)                            # (R, C)
    x2 = jnp.dot(adjb, s2.astype(jnp.bfloat16),
                 preferred_element_type=jnp.float32)                            # (R, C)
    x2 = x2.reshape(Bt, N, C)                                                   # free view

    # --- attention: softmax(feat @ x2^T) @ feat --- (kept f32: exp-amplified, ~1% of flops)
    att = lax.dot_general(f3, x2, (((2,), (2,)), ((0,), (0,))),
                          preferred_element_type=jnp.float32)                   # (Bt, N, N)
    att = att - jnp.max(att, axis=-1, keepdims=True)
    p = jnp.exp(att)
    p = p * pl.reciprocal(jnp.sum(p, axis=-1, keepdims=True), approx=True)
    anat = lax.dot_general(p, f3, (((2,), (1,)), ((0,), (0,))),
                           preferred_element_type=jnp.float32)                  # (Bt, N, C)

    # --- residual + LayerNorm (eps=1e-5); AdaptiveAvgPool2d((N, C)) is identity ---
    anat = anat + f3
    mu = jnp.mean(anat, axis=-1, keepdims=True)
    d = anat - mu
    var = jnp.mean(d * d, axis=-1, keepdims=True)
    anat = d * lax.rsqrt(var + 1e-5) * gamma + beta

    # --- node head: lane-padded (KP=128) columns -> unmasked store, free reshape ---
    anat_bf = anat.reshape(R, C).astype(jnp.bfloat16)
    node = jnp.dot(anat_bf, wn_ref[...], preferred_element_type=jnp.float32) + bn  # (R, KP)
    node_ref[...] = node.reshape(Bt, N, KP).astype(node_ref.dtype)

    # --- graph head on the pooled activation (mean over N first) ---
    pooled = jnp.mean(anat, axis=1).astype(jnp.bfloat16)                        # (Bt, C)
    graph = jnp.dot(pooled, wg_ref[...], preferred_element_type=jnp.float32) + bg
    graph_ref[...] = graph.reshape(Bt, 1, KP).astype(graph_ref.dtype)


def _mxu_target_rows():
    """Rows (Bt*N) to aim for per grid step: 128 on v5e, 256 on v6e/v7x."""
    try:
        kind = jax.devices()[0].device_kind.lower()
    except Exception:
        return 256
    if "v5 lite" in kind or "v5e" in kind or "v5litepod" in kind:
        return 128
    return 256


def _pick_block_b(B, N, target_rows):
    """Largest divisor Bt of B with Bt*N <= target_rows.  Small B collapses to a
    single grid step (filling the MXU M dimension beats splitting across cores)."""
    best = 1
    for bt in range(1, B + 1):
        if B % bt == 0 and bt * N <= target_rows:
            best = bt
    return best


def _vmem_limit_bytes(block_b, N, C, H, KP):
    """Rough per-step VMEM footprint with 2x headroom, capped below v7x's 64 MiB."""
    R = block_b * N
    f32, bf16 = 4, 2
    invariant = (R * R + C * H + H * C + 2 * C * KP) * bf16 + (2 * C + 2 * KP) * f32
    streamed = 2 * R * C * f32                       # double-buffered feature tile
    outputs = 2 * (R * KP + block_b * KP) * f32      # double-buffered output tiles
    scratch = (2 * R * H + 3 * R * C + 2 * block_b * N * N + R * KP) * f32
    est = invariant + streamed + outputs + scratch
    return int(min(max(2 * est, 32 * 1024 * 1024), 48 * 1024 * 1024))


def anaxnet_forward(feature, adj, params, block_b=None):
    B, N, C = feature.shape
    H = params["w1"].shape[1]
    K = params["wn"].shape[1]
    KP = max(128, ((K + 127) // 128) * 128)          # lane-dense head width

    if block_b is None:
        block_b = _pick_block_b(B, N, _mxu_target_rows())
    assert B % block_b == 0
    num_steps = B // block_b
    R = block_b * N

    bf16 = jnp.bfloat16
    # bf16 MXU weights (f32 accumulation in-kernel); LN params / biases stay f32.
    w1 = params["w1"].astype(bf16)
    w2 = params["w2"].astype(bf16)
    wn = jnp.zeros((C, KP), bf16).at[:, :K].set(params["wn"].astype(bf16))
    wg = jnp.zeros((C, KP), bf16).at[:, :K].set(params["wg"].astype(bf16))
    bn = jnp.zeros((1, KP), jnp.float32).at[:, :K].set(params["bn"].astype(jnp.float32))
    bg = jnp.zeros((1, KP), jnp.float32).at[:, :K].set(params["bg"].astype(jnp.float32))
    gamma = params["gamma"].astype(jnp.float32)
    beta = params["beta"].astype(jnp.float32)
    # Block-diagonal adjacency: folds the per-batch (N,N) matmul for a (Bt, N, *) tile
    # into a single 2-D (R,R) @ (R,*) MXU matmul -- no adj broadcast, no tiny batched
    # matmuls.  (R <= 256, so this stays a small tile.)
    adjb = jnp.kron(jnp.eye(block_b, dtype=jnp.float32), adj.astype(jnp.float32)).astype(bf16)

    flops = (2 * B * N * (C * H + R * H + H * C + R * C + N * C + N * C + C * KP)
             + 2 * B * C * KP)
    bytes_accessed = (4 * B * N * C
                      + 2 * (R * R + C * H + H * C + 2 * C * KP)
                      + 4 * (2 * C + 2 * KP)
                      + 4 * (B * N * KP + B * KP))
    cost = pl.CostEstimate(flops=flops, transcendentals=B * N * (N + 2),
                           bytes_accessed=bytes_accessed)

    def _build_and_call(single_buffer_invariants):
        def inv(shape, index_map):
            # Grid-invariant operand: single-buffer it if this jax supports pipeline_mode.
            if single_buffer_invariants:
                try:
                    return pl.BlockSpec(shape, index_map, pipeline_mode=pl.Buffered(1))
                except Exception:
                    pass
            return pl.BlockSpec(shape, index_map)

        grid_spec = pltpu.PrefetchScalarGridSpec(
            num_scalar_prefetch=0,
            grid=(num_steps,),
            in_specs=[
                pl.BlockSpec((block_b, N, C), lambda b: (b, 0, 0)),   # feature (streamed)
                inv((R, R), lambda b: (0, 0)),                        # block-diag adjacency
                inv((C, H), lambda b: (0, 0)),                        # gc1 weight
                inv((H, C), lambda b: (0, 0)),                        # gc2 weight
                inv((1, C), lambda b: (0, 0)),                        # LayerNorm gamma
                inv((1, C), lambda b: (0, 0)),                        # LayerNorm beta
                inv((C, KP), lambda b: (0, 0)),                       # node head weight (padded)
                inv((1, KP), lambda b: (0, 0)),                       # node head bias (padded)
                inv((C, KP), lambda b: (0, 0)),                       # graph head weight (padded)
                inv((1, KP), lambda b: (0, 0)),                       # graph head bias (padded)
            ],
            out_specs=(
                pl.BlockSpec((block_b, N, KP), lambda b: (b, 0, 0)),  # node (lane-dense)
                pl.BlockSpec((block_b, 1, KP), lambda b: (b, 0, 0)),  # graph (lane-dense)
            ),
        )
        return pl.pallas_call(
            anaxnet_kernel,
            out_shape=(
                jax.ShapeDtypeStruct((B, N, KP), jnp.float32),
                jax.ShapeDtypeStruct((B, 1, KP), jnp.float32),
            ),
            grid_spec=grid_spec,
            compiler_params=pltpu.CompilerParams(
                dimension_semantics=("parallel",),
                vmem_limit_bytes=_vmem_limit_bytes(block_b, N, C, H, KP)),
            cost_estimate=cost,
        )(feature, adjb, w1, w2, gamma, beta, wn, bn, wg, bg)

    try:
        node_p, graph_p = _build_and_call(True)
    except Exception:
        # TODO(synk): pipeline_mode=pl.Buffered(1) not supported by this jax version /
        # Mosaic lowering -- fall back to default double-buffered invariant operands.
        node_p, graph_p = _build_and_call(False)

    return node_p[:, :, :K], graph_p[:, 0, :K]


def reference_forward(feature, adj, p):
    """Pure-JAX f32 reference of the PyTorch forward."""
    s1 = jnp.einsum("bnc,ch->bnh", feature, p["w1"])
    x1 = jnp.einsum("ij,bjh->bih", adj, s1)
    x1 = jnp.where(x1 > 0, x1, 0.2 * x1)
    s2 = jnp.einsum("bnh,hc->bnc", x1, p["w2"])
    x2 = jnp.einsum("ij,bjc->bic", adj, s2)
    att = jnp.einsum("bic,bjc->bij", feature, x2)
    att = jax.nn.softmax(att, axis=2)
    anat = jnp.einsum("bij,bjc->bic", att, feature)
    anat = anat + feature
    mu = anat.mean(-1, keepdims=True)
    var = ((anat - mu) ** 2).mean(-1, keepdims=True)
    anat = (anat - mu) / jnp.sqrt(var + 1e-5) * p["gamma"][0] + p["beta"][0]
    node = jnp.einsum("bnc,ck->bnk", anat, p["wn"]) + p["bn"][0]
    g = anat.mean(1)
    graph = g @ p["wg"] + p["bg"][0]
    return node, graph


if __name__ == "__main__":
    # Small shapes consistent with the module (in_channel == anatomy_out for the
    # residual add, as in the original where both are 1024).
    B, N, C, H, K = 2, 8, 128, 256, 16   # batch, anatomy_size, in_channel, gc1 hidden, num_classes

    key = jax.random.PRNGKey(0)
    ks = jax.random.split(key, 8)

    # Deterministic, PyTorch-style uniform(-stdv, stdv) parameter init.
    stdv1 = 1.0 / jnp.sqrt(float(H))
    stdv2 = 1.0 / jnp.sqrt(float(C))
    stdv_fc = 1.0 / jnp.sqrt(float(C))
    params = {
        "w1": jax.random.uniform(ks[0], (C, H), jnp.float32, -stdv1, stdv1),
        "w2": jax.random.uniform(ks[1], (H, C), jnp.float32, -stdv2, stdv2),
        "gamma": jnp.ones((1, C), jnp.float32),
        "beta": jnp.zeros((1, C), jnp.float32),
        "wn": jax.random.uniform(ks[2], (C, K), jnp.float32, -stdv_fc, stdv_fc),
        "bn": jax.random.uniform(ks[3], (1, K), jnp.float32, -stdv_fc, stdv_fc),
        "wg": jax.random.uniform(ks[4], (C, K), jnp.float32, -stdv_fc, stdv_fc),
        "bg": jax.random.uniform(ks[5], (1, K), jnp.float32, -stdv_fc, stdv_fc),
    }
    # Synthetic anatomy adjacency (the original loads a CSV; here: deterministic random).
    adj = jax.random.uniform(ks[6], (N, N), jnp.float32, 0.0, 1.0)
    feature = jax.random.normal(ks[7], (B, N, C), jnp.float32)

    node_level, graph_level = jax.block_until_ready(anaxnet_forward(feature, adj, params))

    node_ref, graph_ref = reference_forward(feature, adj, params)
    assert node_level.shape == (B, N, K) and graph_level.shape == (B, K)
    # Kernel uses bf16 MXU operands with f32 accumulation (per TPU perf guidance);
    # the reference is pure f32, so tolerance reflects bf16 input rounding.
    assert jnp.allclose(node_level, node_ref, rtol=5e-2, atol=5e-2)
    assert jnp.allclose(graph_level, graph_ref, rtol=5e-2, atol=5e-2)

    print("KERNEL_OK")
</pallas_src>

<mosaic_0001>
module attributes {stable_mosaic.version = 11 : i64} {
  func.func @anaxnet_kernel(%arg0: i32, %arg1: memref<2x8x128xf32, #tpu.memory_space<vmem>>, %arg2: memref<16x16xbf16, #tpu.memory_space<vmem>>, %arg3: memref<128x256xbf16, #tpu.memory_space<vmem>>, %arg4: memref<256x128xbf16, #tpu.memory_space<vmem>>, %arg5: memref<1x128xf32, #tpu.memory_space<vmem>>, %arg6: memref<1x128xf32, #tpu.memory_space<vmem>>, %arg7: memref<128x128xbf16, #tpu.memory_space<vmem>>, %arg8: memref<1x128xf32, #tpu.memory_space<vmem>>, %arg9: memref<128x128xbf16, #tpu.memory_space<vmem>>, %arg10: memref<1x128xf32, #tpu.memory_space<vmem>>, %arg11: memref<2x8x128xf32, #tpu.memory_space<vmem>>, %arg12: memref<2x1x128xf32, #tpu.memory_space<vmem>>) attributes {dimension_semantics = [#tpu.dimension_semantics<parallel>], iteration_bounds = array<i64: 1>, scalar_prefetch = 0 : i64, scratch_operands = 0 : i64, tpu.core_type = #tpu.core_type<tc>, window_params = [{transform_indices = @transform_0, window_bounds = array<i64: 2, 8, 128>}, {pipeline_mode = #tpu.pipeline_mode<synchronous>, transform_indices = @transform_1, window_bounds = array<i64: 16, 16>}, {pipeline_mode = #tpu.pipeline_mode<synchronous>, transform_indices = @transform_2, window_bounds = array<i64: 128, 256>}, {pipeline_mode = #tpu.pipeline_mode<synchronous>, transform_indices = @transform_3, window_bounds = array<i64: 256, 128>}, {pipeline_mode = #tpu.pipeline_mode<synchronous>, transform_indices = @transform_4, window_bounds = array<i64: 1, 128>}, {pipeline_mode = #tpu.pipeline_mode<synchronous>, transform_indices = @transform_5, window_bounds = array<i64: 1, 128>}, {pipeline_mode = #tpu.pipeline_mode<synchronous>, transform_indices = @transform_6, window_bounds = array<i64: 128, 128>}, {pipeline_mode = #tpu.pipeline_mode<synchronous>, transform_indices = @transform_7, window_bounds = array<i64: 1, 128>}, {pipeline_mode = #tpu.pipeline_mode<synchronous>, transform_indices = @transform_8, window_bounds = array<i64: 128, 128>}, {pipeline_mode = #tpu.pipeline_mode<synchronous>, transform_indices = @transform_9, window_bounds = array<i64: 1, 128>}, {transform_indices = @transform_10, window_bounds = array<i64: 2, 8, 128>}, {transform_indices = @transform_11, window_bounds = array<i64: 2, 1, 128>}]} {
    %c0 = arith.constant 0 : index
    %c0_0 = arith.constant 0 : index
    %c0_1 = arith.constant 0 : index
    %0 = vector.load %arg1[%c0, %c0_0, %c0_1] : memref<2x8x128xf32, #tpu.memory_space<vmem>>, vector<2x8x128xf32>
    %1 = vector.shape_cast %0 : vector<2x8x128xf32> to vector<16x128xf32>
    %2 = arith.truncf %1 : vector<16x128xf32> to vector<16x128xbf16>
    %c0_2 = arith.constant 0 : index
    %c0_3 = arith.constant 0 : index
    %3 = vector.load %arg2[%c0_2, %c0_3] : memref<16x16xbf16, #tpu.memory_space<vmem>>, vector<16x16xbf16>
    %c0_4 = arith.constant 0 : index
    %c0_5 = arith.constant 0 : index
    %4 = vector.load %arg5[%c0_4, %c0_5] : memref<1x128xf32, #tpu.memory_space<vmem>>, vector<1x128xf32>
    %5 = vector.shape_cast %4 : vector<1x128xf32> to vector<128xf32>
    %c0_6 = arith.constant 0 : index
    %c0_7 = arith.constant 0 : index
    %6 = vector.load %arg6[%c0_6, %c0_7] : memref<1x128xf32, #tpu.memory_space<vmem>>, vector<1x128xf32>
    %7 = vector.shape_cast %6 : vector<1x128xf32> to vector<128xf32>
    %c0_8 = arith.constant 0 : index
    %c0_9 = arith.constant 0 : index
    %8 = vector.load %arg8[%c0_8, %c0_9] : memref<1x128xf32, #tpu.memory_space<vmem>>, vector<1x128xf32>
    %9 = vector.shape_cast %8 : vector<1x128xf32> to vector<128xf32>
    %c0_10 = arith.constant 0 : index
    %c0_11 = arith.constant 0 : index
    %10 = vector.load %arg10[%c0_10, %c0_11] : memref<1x128xf32, #tpu.memory_space<vmem>>, vector<1x128xf32>
    %11 = vector.shape_cast %10 : vector<1x128xf32> to vector<128xf32>
    %c0_12 = arith.constant 0 : index
    %c0_13 = arith.constant 0 : index
    %12 = vector.load %arg3[%c0_12, %c0_13] : memref<128x256xbf16, #tpu.memory_space<vmem>>, vector<128x256xbf16>
    %cst = arith.constant dense<0.000000e+00> : vector<16x256xf32>
    %13 = tpu.matmul %2, %12, %cst {dimension_numbers = #tpu.dot_dimension_numbers<[1], [0], [0], [1], [0, 0, 1, 1], [], []>} : vector<16x128xbf16>, vector<128x256xbf16>, vector<16x256xf32> -> vector<16x256xf32>
    %14 = arith.truncf %13 : vector<16x256xf32> to vector<16x256xbf16>
    %cst_14 = arith.constant dense<0.000000e+00> : vector<16x256xf32>
    %15 = tpu.matmul %3, %14, %cst_14 {dimension_numbers = #tpu.dot_dimension_numbers<[1], [0], [0], [1], [0, 0, 1, 1], [], []>} : vector<16x16xbf16>, vector<16x256xbf16>, vector<16x256xf32> -> vector<16x256xf32>
    %cst_15 = arith.constant 0.000000e+00 : f32
    %16 = vector.broadcast %cst_15 : f32 to vector<16x256xf32>
    %17 = arith.cmpf ogt, %15, %16 : vector<16x256xf32>
    %cst_16 = arith.constant 2.000000e-01 : f32
    %18 = vector.broadcast %cst_16 : f32 to vector<16x256xf32>
    %19 = arith.mulf %18, %15 : vector<16x256xf32>
    %20 = arith.select %17, %15, %19 : vector<16x256xi1>, vector<16x256xf32>
    %21 = arith.truncf %20 : vector<16x256xf32> to vector<16x256xbf16>
    %c0_17 = arith.constant 0 : index
    %c0_18 = arith.constant 0 : index
    %22 = vector.load %arg4[%c0_17, %c0_18] : memref<256x128xbf16, #tpu.memory_space<vmem>>, vector<256x128xbf16>
    %cst_19 = arith.constant dense<0.000000e+00> : vector<16x128xf32>
    %23 = tpu.matmul %21, %22, %cst_19 {dimension_numbers = #tpu.dot_dimension_numbers<[1], [0], [0], [1], [0, 0, 1, 1], [], []>} : vector<16x256xbf16>, vector<256x128xbf16>, vector<16x128xf32> -> vector<16x128xf32>
    %24 = arith.truncf %23 : vector<16x128xf32> to vector<16x128xbf16>
    %cst_20 = arith.constant dense<0.000000e+00> : vector<16x128xf32>
    %25 = tpu.matmul %3, %24, %cst_20 {dimension_numbers = #tpu.dot_dimension_numbers<[1], [0], [0], [1], [0, 0, 1, 1], [], []>} : vector<16x16xbf16>, vector<16x128xbf16>, vector<16x128xf32> -> vector<16x128xf32>
    %26 = vector.shape_cast %25 : vector<16x128xf32> to vector<2x8x128xf32>
    %cst_21 = arith.constant dense<0.000000e+00> : vector<2x8x8xf32>
    %27 = tpu.matmul %0, %26, %cst_21 {dimension_numbers = #tpu.dot_dimension_numbers<[2], [2], [1], [1], [0, 0, 0, 1, 1, 1], [0], [0]>} : vector<2x8x128xf32>, vector<2x8x128xf32>, vector<2x8x8xf32> -> vector<2x8x8xf32>
    %cst_22 = arith.constant dense<0xFF800000> : vector<2x8xf32>
    %28 = vector.multi_reduction <maximumf>, %27, %cst_22 [2] : vector<2x8x8xf32> to vector<2x8xf32>
    %29 = vector.shape_cast %28 : vector<2x8xf32> to vector<2x8x1xf32>
    %30 = vector.broadcast %29 : vector<2x8x1xf32> to vector<2x8x8xf32>
    %31 = arith.subf %27, %30 : vector<2x8x8xf32>
    %32 = math.exp %31 : vector<2x8x8xf32>
    %cst_23 = arith.constant dense<0.000000e+00> : vector<2x8xf32>
    %33 = vector.multi_reduction <add>, %32, %cst_23 [2] : vector<2x8x8xf32> to vector<2x8xf32>
    %34 = vector.shape_cast %33 : vector<2x8xf32> to vector<2x8x1xf32>
    %35 = tpu.reciprocal %34 {approx = true} : vector<2x8x1xf32> -> vector<2x8x1xf32>
    %36 = vector.broadcast %35 : vector<2x8x1xf32> to vector<2x8x8xf32>
    %37 = arith.mulf %32, %36 : vector<2x8x8xf32>
    %cst_24 = arith.constant dense<0.000000e+00> : vector<2x8x128xf32>
    %38 = tpu.matmul %37, %0, %cst_24 {dimension_numbers = #tpu.dot_dimension_numbers<[2], [1], [1], [2], [0, 0, 0, 1, 1, 2], [0], [0]>} : vector<2x8x8xf32>, vector<2x8x128xf32>, vector<2x8x128xf32> -> vector<2x8x128xf32>
    %39 = arith.addf %38, %0 : vector<2x8x128xf32>
    %cst_25 = arith.constant dense<0.000000e+00> : vector<2x8xf32>
    %40 = vector.multi_reduction <add>, %39, %cst_25 [2] : vector<2x8x128xf32> to vector<2x8xf32>
    %41 = vector.shape_cast %40 : vector<2x8xf32> to vector<2x8x1xf32>
    %cst_26 = arith.constant 1.280000e+02 : f32
    %42 = vector.broadcast %cst_26 : f32 to vector<2x8x1xf32>
    %43 = arith.divf %41, %42 : vector<2x8x1xf32>
    %44 = vector.broadcast %43 : vector<2x8x1xf32> to vector<2x8x128xf32>
    %45 = arith.subf %39, %44 : vector<2x8x128xf32>
    %46 = arith.mulf %45, %45 : vector<2x8x128xf32>
    %cst_27 = arith.constant dense<0.000000e+00> : vector<2x8xf32>
    %47 = vector.multi_reduction <add>, %46, %cst_27 [2] : vector<2x8x128xf32> to vector<2x8xf32>
    %48 = vector.shape_cast %47 : vector<2x8xf32> to vector<2x8x1xf32>
    %cst_28 = arith.constant 1.280000e+02 : f32
    %49 = vector.broadcast %cst_28 : f32 to vector<2x8x1xf32>
    %50 = arith.divf %48, %49 : vector<2x8x1xf32>
    %cst_29 = arith.constant 9.99999974E-6 : f32
    %51 = vector.broadcast %cst_29 : f32 to vector<2x8x1xf32>
    %52 = arith.addf %50, %51 : vector<2x8x1xf32>
    %53 = math.rsqrt %52 : vector<2x8x1xf32>
    %54 = vector.broadcast %53 : vector<2x8x1xf32> to vector<2x8x128xf32>
    %55 = arith.mulf %45, %54 : vector<2x8x128xf32>
    %56 = vector.shape_cast %5 : vector<128xf32> to vector<1x1x128xf32>
    %57 = vector.broadcast %56 : vector<1x1x128xf32> to vector<2x8x128xf32>
    %58 = arith.mulf %55, %57 : vector<2x8x128xf32>
    %59 = vector.shape_cast %7 : vector<128xf32> to vector<1x1x128xf32>
    %60 = vector.broadcast %59 : vector<1x1x128xf32> to vector<2x8x128xf32>
    %61 = arith.addf %58, %60 : vector<2x8x128xf32>
    %62 = vector.shape_cast %61 : vector<2x8x128xf32> to vector<16x128xf32>
    %63 = arith.truncf %62 : vector<16x128xf32> to vector<16x128xbf16>
    %c0_30 = arith.constant 0 : index
    %c0_31 = arith.constant 0 : index
    %64 = vector.load %arg7[%c0_30, %c0_31] : memref<128x128xbf16, #tpu.memory_space<vmem>>, vector<128x128xbf16>
    %cst_32 = arith.constant dense<0.000000e+00> : vector<16x128xf32>
    %65 = tpu.matmul %63, %64, %cst_32 {dimension_numbers = #tpu.dot_dimension_numbers<[1], [0], [0], [1], [0, 0, 1, 1], [], []>} : vector<16x128xbf16>, vector<128x128xbf16>, vector<16x128xf32> -> vector<16x128xf32>
    %66 = vector.shape_cast %9 : vector<128xf32> to vector<1x128xf32>
    %67 = vector.broadcast %66 : vector<1x128xf32> to vector<16x128xf32>
    %68 = arith.addf %65, %67 : vector<16x128xf32>
    %69 = vector.shape_cast %68 : vector<16x128xf32> to vector<2x8x128xf32>
    %c0_33 = arith.constant 0 : index
    %c0_34 = arith.constant 0 : index
    %c0_35 = arith.constant 0 : index
    %70 = vector.load %arg11[%c0_33, %c0_34, %c0_35] : memref<2x8x128xf32, #tpu.memory_space<vmem>>, vector<2x8x128xf32>
    tpu.vector_store %arg11[%c0_33, %c0_34, %c0_35], %69 {strides = array<i32>} : memref<2x8x128xf32, #tpu.memory_space<vmem>>, vector<2x8x128xf32>,
    %cst_36 = arith.constant dense<0.000000e+00> : vector<2x128xf32>
    %71 = vector.multi_reduction <add>, %61, %cst_36 [1] : vector<2x8x128xf32> to vector<2x128xf32>
    %cst_37 = arith.constant 8.000000e+00 : f32
    %72 = vector.broadcast %cst_37 : f32 to vector<2x128xf32>
    %73 = arith.divf %71, %72 : vector<2x128xf32>
    %74 = arith.truncf %73 : vector<2x128xf32> to vector<2x128xbf16>
    %c0_38 = arith.constant 0 : index
    %c0_39 = arith.constant 0 : index
    %75 = vector.load %arg9[%c0_38, %c0_39] : memref<128x128xbf16, #tpu.memory_space<vmem>>, vector<128x128xbf16>
    %cst_40 = arith.constant dense<0.000000e+00> : vector<2x128xf32>
    %76 = tpu.matmul %74, %75, %cst_40 {dimension_numbers = #tpu.dot_dimension_numbers<[1], [0], [0], [1], [0, 0, 1, 1], [], []>} : vector<2x128xbf16>, vector<128x128xbf16>, vector<2x128xf32> -> vector<2x128xf32>
    %77 = vector.shape_cast %11 : vector<128xf32> to vector<1x128xf32>
    %78 = vector.broadcast %77 : vector<1x128xf32> to vector<2x128xf32>
    %79 = arith.addf %76, %78 : vector<2x128xf32>
    %80 = vector.shape_cast %79 : vector<2x128xf32> to vector<2x1x128xf32>
    %c0_41 = arith.constant 0 : index
    %c0_42 = arith.constant 0 : index
    %c0_43 = arith.constant 0 : index
    %81 = vector.load %arg12[%c0_41, %c0_42, %c0_43] : memref<2x1x128xf32, #tpu.memory_space<vmem>>, vector<2x1x128xf32>
    tpu.vector_store %arg12[%c0_41, %c0_42, %c0_43], %80 {strides = array<i32>} : memref<2x1x128xf32, #tpu.memory_space<vmem>>, vector<2x1x128xf32>,
    return
  }
  func.func @transform_0(%arg0: i32) -> (i32, i32, i32) {
    %c0_i32 = arith.constant 0 : i32
    %c0_i32_0 = arith.constant 0 : i32
    %c0_i32_1 = arith.constant 0 : i32
    return %arg0, %c0_i32, %c0_i32_0 : i32, i32, i32
  }
  func.func @transform_1(%arg0: i32) -> (i32, i32) {
    %c0_i32 = arith.constant 0 : i32
    %c0_i32_0 = arith.constant 0 : i32
    %c0_i32_1 = arith.constant 0 : i32
    return %c0_i32, %c0_i32_0 : i32, i32
  }
  func.func @transform_2(%arg0: i32) -> (i32, i32) {
    %c0_i32 = arith.constant 0 : i32
    %c0_i32_0 = arith.constant 0 : i32
    %c0_i32_1 = arith.constant 0 : i32
    return %c0_i32, %c0_i32_0 : i32, i32
  }
  func.func @transform_3(%arg0: i32) -> (i32, i32) {
    %c0_i32 = arith.constant 0 : i32
    %c0_i32_0 = arith.constant 0 : i32
    %c0_i32_1 = arith.constant 0 : i32
    return %c0_i32, %c0_i32_0 : i32, i32
  }
  func.func @transform_4(%arg0: i32) -> (i32, i32) {
    %c0_i32 = arith.constant 0 : i32
    %c0_i32_0 = arith.constant 0 : i32
    %c0_i32_1 = arith.constant 0 : i32
    return %c0_i32, %c0_i32_0 : i32, i32
  }
  func.func @transform_5(%arg0: i32) -> (i32, i32) {
    %c0_i32 = arith.constant 0 : i32
    %c0_i32_0 = arith.constant 0 : i32
    %c0_i32_1 = arith.constant 0 : i32
    return %c0_i32, %c0_i32_0 : i32, i32
  }
  func.func @transform_6(%arg0: i32) -> (i32, i32) {
    %c0_i32 = arith.constant 0 : i32
    %c0_i32_0 = arith.constant 0 : i32
    %c0_i32_1 = arith.constant 0 : i32
    return %c0_i32, %c0_i32_0 : i32, i32
  }
  func.func @transform_7(%arg0: i32) -> (i32, i32) {
    %c0_i32 = arith.constant 0 : i32
    %c0_i32_0 = arith.constant 0 : i32
    %c0_i32_1 = arith.constant 0 : i32
    return %c0_i32, %c0_i32_0 : i32, i32
  }
  func.func @transform_8(%arg0: i32) -> (i32, i32) {
    %c0_i32 = arith.constant 0 : i32
    %c0_i32_0 = arith.constant 0 : i32
    %c0_i32_1 = arith.constant 0 : i32
    return %c0_i32, %c0_i32_0 : i32, i32
  }
  func.func @transform_9(%arg0: i32) -> (i32, i32) {
    %c0_i32 = arith.constant 0 : i32
    %c0_i32_0 = arith.constant 0 : i32
    %c0_i32_1 = arith.constant 0 : i32
    return %c0_i32, %c0_i32_0 : i32, i32
  }
  func.func @transform_10(%arg0: i32) -> (i32, i32, i32) {
    %c0_i32 = arith.constant 0 : i32
    %c0_i32_0 = arith.constant 0 : i32
    %c0_i32_1 = arith.constant 0 : i32
    return %arg0, %c0_i32, %c0_i32_0 : i32, i32, i32
  }
  func.func @transform_11(%arg0: i32) -> (i32, i32, i32) {
    %c0_i32 = arith.constant 0 : i32
    %c0_i32_0 = arith.constant 0 : i32
    %c0_i32_1 = arith.constant 0 : i32
    return %arg0, %c0_i32, %c0_i32_0 : i32, i32, i32
  }
}

module attributes {stable_mosaic.version = 11 : i64} {
  func.func @anaxnet_kernel(%arg0: i32, %arg1: memref<2x8x128xf32, #tpu.memory_space<vmem>>, %arg2: memref<16x16xbf16, #tpu.memory_space<vmem>>, %arg3: memref<128x256xbf16, #tpu.memory_space<vmem>>, %arg4: memref<256x128xbf16, #tpu.memory_space<vmem>>, %arg5: memref<1x128xf32, #tpu.memory_space<vmem>>, %arg6: memref<1x128xf32, #tpu.memory_space<vmem>>, %arg7: memref<128x128xbf16, #tpu.memory_space<vmem>>, %arg8: memref<1x128xf32, #tpu.memory_space<vmem>>, %arg9: memref<128x128xbf16, #tpu.memory_space<vmem>>, %arg10: memref<1x128xf32, #tpu.memory_space<vmem>>, %arg11: memref<2x8x128xf32, #tpu.memory_space<vmem>>, %arg12: memref<2x1x128xf32, #tpu.memory_space<vmem>>) attributes {dimension_semantics = [#tpu.dimension_semantics<parallel>], iteration_bounds = array<i64: 1>, scalar_prefetch = 0 : i64, scratch_operands = 0 : i64, tpu.core_type = #tpu.core_type<tc>, window_params = [{transform_indices = @transform_0, window_bounds = array<i64: 2, 8, 128>}, {pipeline_mode = #tpu.pipeline_mode<synchronous>, transform_indices = @transform_1, window_bounds = array<i64: 16, 16>}, {pipeline_mode = #tpu.pipeline_mode<synchronous>, transform_indices = @transform_2, window_bounds = array<i64: 128, 256>}, {pipeline_mode = #tpu.pipeline_mode<synchronous>, transform_indices = @transform_3, window_bounds = array<i64: 256, 128>}, {pipeline_mode = #tpu.pipeline_mode<synchronous>, transform_indices = @transform_4, window_bounds = array<i64: 1, 128>}, {pipeline_mode = #tpu.pipeline_mode<synchronous>, transform_indices = @transform_5, window_bounds = array<i64: 1, 128>}, {pipeline_mode = #tpu.pipeline_mode<synchronous>, transform_indices = @transform_6, window_bounds = array<i64: 128, 128>}, {pipeline_mode = #tpu.pipeline_mode<synchronous>, transform_indices = @transform_7, window_bounds = array<i64: 1, 128>}, {pipeline_mode = #tpu.pipeline_mode<synchronous>, transform_indices = @transform_8, window_bounds = array<i64: 128, 128>}, {pipeline_mode = #tpu.pipeline_mode<synchronous>, transform_indices = @transform_9, window_bounds = array<i64: 1, 128>}, {transform_indices = @transform_10, window_bounds = array<i64: 2, 8, 128>}, {transform_indices = @transform_11, window_bounds = array<i64: 2, 1, 128>}]} {
    %c0 = arith.constant 0 : index
    %c0_0 = arith.constant 0 : index
    %c0_1 = arith.constant 0 : index
    %0 = vector.load %arg1[%c0, %c0_0, %c0_1] : memref<2x8x128xf32, #tpu.memory_space<vmem>>, vector<2x8x128xf32>
    %1 = vector.shape_cast %0 : vector<2x8x128xf32> to vector<16x128xf32>
    %2 = arith.truncf %1 : vector<16x128xf32> to vector<16x128xbf16>
    %c0_2 = arith.constant 0 : index
    %c0_3 = arith.constant 0 : index
    %3 = vector.load %arg2[%c0_2, %c0_3] : memref<16x16xbf16, #tpu.memory_space<vmem>>, vector<16x16xbf16>
    %c0_4 = arith.constant 0 : index
    %c0_5 = arith.constant 0 : index
    %4 = vector.load %arg5[%c0_4, %c0_5] : memref<1x128xf32, #tpu.memory_space<vmem>>, vector<1x128xf32>
    %5 = vector.shape_cast %4 : vector<1x128xf32> to vector<128xf32>
    %c0_6 = arith.constant 0 : index
    %c0_7 = arith.constant 0 : index
    %6 = vector.load %arg6[%c0_6, %c0_7] : memref<1x128xf32, #tpu.memory_space<vmem>>, vector<1x128xf32>
    %7 = vector.shape_cast %6 : vector<1x128xf32> to vector<128xf32>
    %c0_8 = arith.constant 0 : index
    %c0_9 = arith.constant 0 : index
    %8 = vector.load %arg8[%c0_8, %c0_9] : memref<1x128xf32, #tpu.memory_space<vmem>>, vector<1x128xf32>
    %9 = vector.shape_cast %8 : vector<1x128xf32> to vector<128xf32>
    %c0_10 = arith.constant 0 : index
    %c0_11 = arith.constant 0 : index
    %10 = vector.load %arg10[%c0_10, %c0_11] : memref<1x128xf32, #tpu.memory_space<vmem>>, vector<1x128xf32>
    %11 = vector.shape_cast %10 : vector<1x128xf32> to vector<128xf32>
    %c0_12 = arith.constant 0 : index
    %c0_13 = arith.constant 0 : index
    %12 = vector.load %arg3[%c0_12, %c0_13] : memref<128x256xbf16, #tpu.memory_space<vmem>>, vector<128x256xbf16>
    %cst = arith.constant dense<0.000000e+00> : vector<16x256xf32>
    %13 = tpu.matmul %2, %12, %cst {dimension_numbers = #tpu.dot_dimension_numbers<[1], [0], [0], [1], [0, 0, 1, 1], [], []>} : vector<16x128xbf16>, vector<128x256xbf16>, vector<16x256xf32> -> vector<16x256xf32>
    %14 = arith.truncf %13 : vector<16x256xf32> to vector<16x256xbf16>
    %cst_14 = arith.constant dense<0.000000e+00> : vector<16x256xf32>
    %15 = tpu.matmul %3, %14, %cst_14 {dimension_numbers = #tpu.dot_dimension_numbers<[1], [0], [0], [1], [0, 0, 1, 1], [], []>} : vector<16x16xbf16>, vector<16x256xbf16>, vector<16x256xf32> -> vector<16x256xf32>
    %cst_15 = arith.constant 0.000000e+00 : f32
    %16 = vector.broadcast %cst_15 : f32 to vector<16x256xf32>
    %17 = arith.cmpf ogt, %15, %16 : vector<16x256xf32>
    %cst_16 = arith.constant 2.000000e-01 : f32
    %18 = vector.broadcast %cst_16 : f32 to vector<16x256xf32>
    %19 = arith.mulf %18, %15 : vector<16x256xf32>
    %20 = arith.select %17, %15, %19 : vector<16x256xi1>, vector<16x256xf32>
    %21 = arith.truncf %20 : vector<16x256xf32> to vector<16x256xbf16>
    %c0_17 = arith.constant 0 : index
    %c0_18 = arith.constant 0 : index
    %22 = vector.load %arg4[%c0_17, %c0_18] : memref<256x128xbf16, #tpu.memory_space<vmem>>, vector<256x128xbf16>
    %cst_19 = arith.constant dense<0.000000e+00> : vector<16x128xf32>
    %23 = tpu.matmul %21, %22, %cst_19 {dimension_numbers = #tpu.dot_dimension_numbers<[1], [0], [0], [1], [0, 0, 1, 1], [], []>} : vector<16x256xbf16>, vector<256x128xbf16>, vector<16x128xf32> -> vector<16x128xf32>
    %24 = arith.truncf %23 : vector<16x128xf32> to vector<16x128xbf16>
    %cst_20 = arith.constant dense<0.000000e+00> : vector<16x128xf32>
    %25 = tpu.matmul %3, %24, %cst_20 {dimension_numbers = #tpu.dot_dimension_numbers<[1], [0], [0], [1], [0, 0, 1, 1], [], []>} : vector<16x16xbf16>, vector<16x128xbf16>, vector<16x128xf32> -> vector<16x128xf32>
    %26 = vector.shape_cast %25 : vector<16x128xf32> to vector<2x8x128xf32>
    %cst_21 = arith.constant dense<0.000000e+00> : vector<2x8x8xf32>
    %27 = tpu.matmul %0, %26, %cst_21 {dimension_numbers = #tpu.dot_dimension_numbers<[2], [2], [1], [1], [0, 0, 0, 1, 1, 1], [0], [0]>} : vector<2x8x128xf32>, vector<2x8x128xf32>, vector<2x8x8xf32> -> vector<2x8x8xf32>
    %cst_22 = arith.constant dense<0xFF800000> : vector<2x8xf32>
    %28 = vector.multi_reduction <maximumf>, %27, %cst_22 [2] : vector<2x8x8xf32> to vector<2x8xf32>
    %29 = vector.shape_cast %28 : vector<2x8xf32> to vector<2x8x1xf32>
    %30 = vector.broadcast %29 : vector<2x8x1xf32> to vector<2x8x8xf32>
    %31 = arith.subf %27, %30 : vector<2x8x8xf32>
    %32 = math.exp %31 : vector<2x8x8xf32>
    %cst_23 = arith.constant dense<0.000000e+00> : vector<2x8xf32>
    %33 = vector.multi_reduction <add>, %32, %cst_23 [2] : vector<2x8x8xf32> to vector<2x8xf32>
    %34 = vector.shape_cast %33 : vector<2x8xf32> to vector<2x8x1xf32>
    %35 = tpu.reciprocal %34 {approx = true} : vector<2x8x1xf32> -> vector<2x8x1xf32>
    %36 = vector.broadcast %35 : vector<2x8x1xf32> to vector<2x8x8xf32>
    %37 = arith.mulf %32, %36 : vector<2x8x8xf32>
    %cst_24 = arith.constant dense<0.000000e+00> : vector<2x8x128xf32>
    %38 = tpu.matmul %37, %0, %cst_24 {dimension_numbers = #tpu.dot_dimension_numbers<[2], [1], [1], [2], [0, 0, 0, 1, 1, 2], [0], [0]>} : vector<2x8x8xf32>, vector<2x8x128xf32>, vector<2x8x128xf32> -> vector<2x8x128xf32>
    %39 = arith.addf %38, %0 : vector<2x8x128xf32>
    %cst_25 = arith.constant dense<0.000000e+00> : vector<2x8xf32>
    %40 = vector.multi_reduction <add>, %39, %cst_25 [2] : vector<2x8x128xf32> to vector<2x8xf32>
    %41 = vector.shape_cast %40 : vector<2x8xf32> to vector<2x8x1xf32>
    %cst_26 = arith.constant 1.280000e+02 : f32
    %42 = vector.broadcast %cst_26 : f32 to vector<2x8x1xf32>
    %43 = arith.divf %41, %42 : vector<2x8x1xf32>
    %44 = vector.broadcast %43 : vector<2x8x1xf32> to vector<2x8x128xf32>
    %45 = arith.subf %39, %44 : vector<2x8x128xf32>
    %46 = arith.mulf %45, %45 : vector<2x8x128xf32>
    %cst_27 = arith.constant dense<0.000000e+00> : vector<2x8xf32>
    %47 = vector.multi_reduction <add>, %46, %cst_27 [2] : vector<2x8x128xf32> to vector<2x8xf32>
    %48 = vector.shape_cast %47 : vector<2x8xf32> to vector<2x8x1xf32>
    %cst_28 = arith.constant 1.280000e+02 : f32
    %49 = vector.broadcast %cst_28 : f32 to vector<2x8x1xf32>
    %50 = arith.divf %48, %49 : vector<2x8x1xf32>
    %cst_29 = arith.constant 9.99999974E-6 : f32
    %51 = vector.broadcast %cst_29 : f32 to vector<2x8x1xf32>
    %52 = arith.addf %50, %51 : vector<2x8x1xf32>
    %53 = math.rsqrt %52 : vector<2x8x1xf32>
    %54 = vector.broadcast %53 : vector<2x8x1xf32> to vector<2x8x128xf32>
    %55 = arith.mulf %45, %54 : vector<2x8x128xf32>
    %56 = vector.shape_cast %5 : vector<128xf32> to vector<1x1x128xf32>
    %57 = vector.broadcast %56 : vector<1x1x128xf32> to vector<2x8x128xf32>
    %58 = arith.mulf %55, %57 : vector<2x8x128xf32>
    %59 = vector.shape_cast %7 : vector<128xf32> to vector<1x1x128xf32>
    %60 = vector.broadcast %59 : vector<1x1x128xf32> to vector<2x8x128xf32>
    %61 = arith.addf %58, %60 : vector<2x8x128xf32>
    %62 = vector.shape_cast %61 : vector<2x8x128xf32> to vector<16x128xf32>
    %63 = arith.truncf %62 : vector<16x128xf32> to vector<16x128xbf16>
    %c0_30 = arith.constant 0 : index
    %c0_31 = arith.constant 0 : index
    %64 = vector.load %arg7[%c0_30, %c0_31] : memref<128x128xbf16, #tpu.memory_space<vmem>>, vector<128x128xbf16>
    %cst_32 = arith.constant dense<0.000000e+00> : vector<16x128xf32>
    %65 = tpu.matmul %63, %64, %cst_32 {dimension_numbers = #tpu.dot_dimension_numbers<[1], [0], [0], [1], [0, 0, 1, 1], [], []>} : vector<16x128xbf16>, vector<128x128xbf16>, vector<16x128xf32> -> vector<16x128xf32>
    %66 = vector.shape_cast %9 : vector<128xf32> to vector<1x128xf32>
    %67 = vector.broadcast %66 : vector<1x128xf32> to vector<16x128xf32>
    %68 = arith.addf %65, %67 : vector<16x128xf32>
    %69 = vector.shape_cast %68 : vector<16x128xf32> to vector<2x8x128xf32>
    %c0_33 = arith.constant 0 : index
    %c0_34 = arith.constant 0 : index
    %c0_35 = arith.constant 0 : index
    %70 = vector.load %arg11[%c0_33, %c0_34, %c0_35] : memref<2x8x128xf32, #tpu.memory_space<vmem>>, vector<2x8x128xf32>
    tpu.vector_store %arg11[%c0_33, %c0_34, %c0_35], %69 {strides = array<i32>} : memref<2x8x128xf32, #tpu.memory_space<vmem>>, vector<2x8x128xf32>,
    %cst_36 = arith.constant dense<0.000000e+00> : vector<2x128xf32>
    %71 = vector.multi_reduction <add>, %61, %cst_36 [1] : vector<2x8x128xf32> to vector<2x128xf32>
    %cst_37 = arith.constant 8.000000e+00 : f32
    %72 = vector.broadcast %cst_37 : f32 to vector<2x128xf32>
    %73 = arith.divf %71, %72 : vector<2x128xf32>
    %74 = arith.truncf %73 : vector<2x128xf32> to vector<2x128xbf16>
    %c0_38 = arith.constant 0 : index
    %c0_39 = arith.constant 0 : index
    %75 = vector.load %arg9[%c0_38, %c0_39] : memref<128x128xbf16, #tpu.memory_space<vmem>>, vector<128x128xbf16>
    %cst_40 = arith.constant dense<0.000000e+00> : vector<2x128xf32>
    %76 = tpu.matmul %74, %75, %cst_40 {dimension_numbers = #tpu.dot_dimension_numbers<[1], [0], [0], [1], [0, 0, 1, 1], [], []>} : vector<2x128xbf16>, vector<128x128xbf16>, vector<2x128xf32> -> vector<2x128xf32>
    %77 = vector.shape_cast %11 : vector<128xf32> to vector<1x128xf32>
    %78 = vector.broadcast %77 : vector<1x128xf32> to vector<2x128xf32>
    %79 = arith.addf %76, %78 : vector<2x128xf32>
    %80 = vector.shape_cast %79 : vector<2x128xf32> to vector<2x1x128xf32>
    %c0_41 = arith.constant 0 : index
    %c0_42 = arith.constant 0 : index
    %c0_43 = arith.constant 0 : index
    %81 = vector.load %arg12[%c0_41, %c0_42, %c0_43] : memref<2x1x128xf32, #tpu.memory_space<vmem>>, vector<2x1x128xf32>
    tpu.vector_store %arg12[%c0_41, %c0_42, %c0_43], %80 {strides = array<i32>} : memref<2x1x128xf32, #tpu.memory_space<vmem>>, vector<2x1x128xf32>,
    return
  }
  func.func @transform_0(%arg0: i32) -> (i32, i32, i32) {
    %c0_i32 = arith.constant 0 : i32
    %c0_i32_0 = arith.constant 0 : i32
    %c0_i32_1 = arith.constant 0 : i32
    return %arg0, %c0_i32, %c0_i32_0 : i32, i32, i32
  }
  func.func @transform_1(%arg0: i32) -> (i32, i32) {
    %c0_i32 = arith.constant 0 : i32
    %c0_i32_0 = arith.constant 0 : i32
    %c0_i32_1 = arith.constant 0 : i32
    return %c0_i32, %c0_i32_0 : i32, i32
  }
  func.func @transform_2(%arg0: i32) -> (i32, i32) {
    %c0_i32 = arith.constant 0 : i32
    %c0_i32_0 = arith.constant 0 : i32
    %c0_i32_1 = arith.constant 0 : i32
    return %c0_i32, %c0_i32_0 : i32, i32
  }
  func.func @transform_3(%arg0: i32) -> (i32, i32) {
    %c0_i32 = arith.constant 0 : i32
    %c0_i32_0 = arith.constant 0 : i32
    %c0_i32_1 = arith.constant 0 : i32
    return %c0_i32, %c0_i32_0 : i32, i32
  }
  func.func @transform_4(%arg0: i32) -> (i32, i32) {
    %c0_i32 = arith.constant 0 : i32
    %c0_i32_0 = arith.constant 0 : i32
    %c0_i32_1 = arith.constant 0 : i32
    return %c0_i32, %c0_i32_0 : i32, i32
  }
  func.func @transform_5(%arg0: i32) -> (i32, i32) {
    %c0_i32 = arith.constant 0 : i32
    %c0_i32_0 = arith.constant 0 : i32
    %c0_i32_1 = arith.constant 0 : i32
    return %c0_i32, %c0_i32_0 : i32, i32
  }
  func.func @transform_6(%arg0: i32) -> (i32, i32) {
    %c0_i32 = arith.constant 0 : i32
    %c0_i32_0 = arith.constant 0 : i32
    %c0_i32_1 = arith.constant 0 : i32
    return %c0_i32, %c0_i32_0 : i32, i32
  }
  func.func @transform_7(%arg0: i32) -> (i32, i32) {
    %c0_i32 = arith.constant 0 : i32
    %c0_i32_0 = arith.constant 0 : i32
    %c0_i32_1 = arith.constant 0 : i32
    return %c0_i32, %c0_i32_0 : i32, i32
  }
  func.func @transform_8(%arg0: i32) -> (i32, i32) {
    %c0_i32 = arith.constant 0 : i32
    %c0_i32_0 = arith.constant 0 : i32
    %c0_i32_1 = arith.constant 0 : i32
    return %c0_i32, %c0_i32_0 : i32, i32
  }
  func.func @transform_9(%arg0: i32) -> (i32, i32) {
    %c0_i32 = arith.constant 0 : i32
    %c0_i32_0 = arith.constant 0 : i32
    %c0_i32_1 = arith.constant 0 : i32
    return %c0_i32, %c0_i32_0 : i32, i32
  }
  func.func @transform_10(%arg0: i32) -> (i32, i32, i32) {
    %c0_i32 = arith.constant 0 : i32
    %c0_i32_0 = arith.constant 0 : i32
    %c0_i32_1 = arith.constant 0 : i32
    return %arg0, %c0_i32, %c0_i32_0 : i32, i32, i32
  }
  func.func @transform_11(%arg0: i32) -> (i32, i32, i32) {
    %c0_i32 = arith.constant 0 : i32
    %c0_i32_0 = arith.constant 0 : i32
    %c0_i32_1 = arith.constant 0 : i32
    return %arg0, %c0_i32, %c0_i32_0 : i32, i32, i32
  }
}

</mosaic_0001>

<bundles_post_ra>
// kernel: tpu_custom_call.1
= control target key start
LH: loop header
LB: loop body
LE: loop exit
PB: predicated region body
PF: predicated region fallthrough
CT: control target
= control target key end

     0   :  { %17 = vsyncpa [#allocation3], 0  ;;  %s1837_s0 = inlined_call_operand.hbm [shape: f32[2,8,128], index: 0, kind: input, shape index: {}]   ;;  %s1838_s1 = inlined_call_operand.hbm [shape: bf16[16,16], index: 1, kind: input, shape index: {}]   ;;  %s1839_s2 = inlined_call_operand.hbm [shape: bf16[128,256], index: 2, kind: input, shape index: {}]   ;;  %s1840_s3 = inlined_call_operand.hbm [shape: bf16[256,128], index: 3, kind: input, shape index: {}]   ;;  %s1841_s4 = inlined_call_operand.vmem [shape: f32[1,128], index: 4, kind: input, shape index: {}]   ;;  %s1842_s5 = inlined_call_operand.vmem [shape: f32[1,128], index: 5, kind: input, shape index: {}]   ;;  %s1843_s6 = inlined_call_operand.hbm [shape: bf16[128,128], index: 6, kind: input, shape index: {}]   ;;  %s1844_s7 = inlined_call_operand.vmem [shape: f32[1,128], index: 7, kind: input, shape index: {}]   ;;  %s1845_s8 = inlined_call_operand.hbm [shape: bf16[128,128], index: 8, kind: input, shape index: {}]   ;;  %s1846_s9 = inlined_call_operand.vmem [shape: f32[1,128], index: 9, kind: input, shape index: {}]   ;;  %s1847_s10 = inlined_call_operand.hbm [shape: f32[2,8,128], index: 10, kind: output, shape index: {0}]   ;;  %s1848_s11 = inlined_call_operand.hbm [shape: f32[2,1,128], index: 11, kind: output, shape index: {1}]  }
   0x1   :  { %18 = vsyncpa [#allocation6], 0 }
   0x2   :  { %19 = vsyncpa [#allocation9], 0 }
   0x3   :  { %20 = vsyncpa [#allocation12], 0 }
   0x4   :  { %21 = vsyncpa [#allocation4], 0 }
   0x5   :  { %22 = vsyncpa [#allocation15], 0  ;;  %s1643_s17 = smov [#allocation5]  }
   0x6   :  { %s40_s18 = sshll.u32 %s1643_s17, 4  ;;  %s41_s18 = int_to_ptr.vmem [resolvable:$true] %s40_s18 }
   0x7   :  { %s1479_s19 = scalar_lea.vmem %s41_s18, 128  ;;  %p1484_p1 = scmp.lt.s32.totalorder %s41_s18, %s41_s18 }
   0x8   :  { %p1480_p0 = scmp.ne.s32.totalorder %s41_s18, %s1479_s19  ;;  %p1485_p2 = scmp.lt.s32.totalorder %s1479_s19, %s1479_s19 }
   0xa   :  { %p1486_p3 = por %p1485_p2, %p1484_p1 }
   0xc   :  { %p1487_p4 = pnand %p1486_p3, %p1480_p0 }
   0xe   :  { %1490 = shalt.err (!%p1487_p4)
}
   0xf   :  { %s1644_s20 = smov 64   ;;  %s1645_s21 = smov 4  }
  0x10   :  { %46 = dma.hbm_to_vmem [thread:$0]  %s1838_s1, 128, %s41_s18, [#allocation6], %s1644_s20, %s1644_s20, %s1645_s21  }
  0x11   :  { %s1646_s24 = smov [#allocation8]   ;;  %s1647_s26 = smov [#allocation2]  }
  0x12   :  { %s64_s25 = sshll.u32 %s1646_s24, 4  ;;  %s28_s27 = sshll.u32 %s1647_s26, 4  ;;  %s65_s25 = int_to_ptr.vmem [resolvable:$true] %s64_s25  ;;  %s29_s27 = int_to_ptr.vmem [resolvable:$true] %s28_s27 }
  0x13   :  { %s1499_s28 = scalar_lea.vmem %s65_s25, 2048  ;;  %p1504_p6 = scmp.lt.s32.totalorder %s65_s25, %s65_s25 }
  0x14   :  { %p1500_p5 = scmp.ne.s32.totalorder %s65_s25, %s1499_s28  ;;  %p1505_p7 = scmp.lt.s32.totalorder %s1499_s28, %s1499_s28 }
  0x16   :  { %p1506_p8 = por %p1505_p7, %p1504_p6 }
  0x18   :  { %p1507_p9 = pnand %p1506_p8, %p1500_p5 }
  0x1a   :  { %1510 = shalt.err (!%p1507_p9)
}
  0x1b   :  { %70 = dma.hbm_to_vmem [thread:$0]  %s1840_s3, 2048, %s65_s25, [#allocation9], %s1644_s20, %s1644_s20, %s1645_s21  }
  0x1c   :  { %s1519_s1 = scalar_lea.vmem %s29_s27, 256  ;;  %p1524_p11 = scmp.lt.s32.totalorder %s29_s27, %s29_s27 }
  0x1d   :  { %p1520_p10 = scmp.ne.s32.totalorder %s29_s27, %s1519_s1  ;;  %p1525_p12 = scmp.lt.s32.totalorder %s1519_s1, %s1519_s1 }
  0x1f   :  { %p1526_p13 = por %p1525_p12, %p1524_p11 }
  0x21   :  { %p1527_p0 = pnand %p1526_p13, %p1520_p10 }
  0x23   :  { %1530 = shalt.err (!%p1527_p0)
}
  0x24   :  { %s1648_s12 = smov 128   ;;  %s1649_s13 = smov 8  }
  0x25   :  { %34 = dma.hbm_to_vmem [thread:$0]  %s1837_s0, 256, %s29_s27, [#allocation3], %s1648_s12, %s1648_s12, %s1649_s13  }
  0x26   :  { %s1650_s16 = smov [#allocation7]   ;;  %s1651_s3 = smov [#allocation10]  }
  0x27   :  { %s52_s17 = sshll.u32 %s1650_s16, 4  ;;  %s80_s18 = sshll.u32 %s1651_s3, 4  ;;  %s53_s17 = int_to_ptr.vmem [resolvable:$true] %s52_s17  ;;  %s81_s18 = int_to_ptr.vmem [resolvable:$true] %s80_s18 }
  0x28   :  { %s1539_s19 = scalar_lea.vmem %s53_s17, 2048  ;;  %p1544_p2 = scmp.lt.s32.totalorder %s53_s17, %s53_s17 }
  0x29   :  { %p1540_p1 = scmp.ne.s32.totalorder %s53_s17, %s1539_s19  ;;  %p1545_p3 = scmp.lt.s32.totalorder %s1539_s19, %s1539_s19 }
  0x2b   :  { %p1546_p4 = por %p1545_p3, %p1544_p2 }
  0x2d   :  { %p1547_p5 = pnand %p1546_p4, %p1540_p1 }
  0x2f   :  { %1550 = shalt.err (!%p1547_p5)
}
  0x30   :  { %58 = dma.hbm_to_vmem [thread:$0]  %s1839_s2, 2048, %s53_s17, [#allocation6], %s1648_s12, %s1648_s12, %s1649_s13  }
  0x31   :  { %s1559_s0 = scalar_lea.vmem %s81_s18, 1024  ;;  %p1564_p7 = scmp.lt.s32.totalorder %s81_s18, %s81_s18 }
  0x32   :  { %p1560_p6 = scmp.ne.s32.totalorder %s81_s18, %s1559_s0  ;;  %p1565_p8 = scmp.lt.s32.totalorder %s1559_s0, %s1559_s0 }
  0x34   :  { %p1566_p9 = por %p1565_p8, %p1564_p7 }
  0x36   :  { %p1567_p10 = pnand %p1566_p9, %p1560_p6 }
  0x38   :  { %1570 = shalt.err (!%p1567_p10)
}
  0x39   :  { %86 = dma.hbm_to_vmem [thread:$0]  %s1843_s6, 1024, %s81_s18, [#allocation9], %s1644_s20, %s1644_s20, %s1645_s21  }
  0x3a   :  { %s1652_s26 = smov [#allocation11]  }
  0x3b   :  { %s94_s27 = sshll.u32 %s1652_s26, 4  ;;  %s95_s27 = int_to_ptr.vmem [resolvable:$true] %s94_s27 }
  0x3c   :  { %s1579_s28 = scalar_lea.vmem %s95_s27, 1024  ;;  %p1584_p12 = scmp.lt.s32.totalorder %s95_s27, %s95_s27 }
  0x3d   :  { %p1580_p11 = scmp.ne.s32.totalorder %s95_s27, %s1579_s28  ;;  %p1585_p13 = scmp.lt.s32.totalorder %s1579_s28, %s1579_s28 }
  0x3f   :  { %p1586_p0 = por %p1585_p13, %p1584_p12 }
  0x41   :  { %p1587_p1 = pnand %p1586_p0, %p1580_p11 }
  0x43   :  { %1590 = shalt.err (!%p1587_p1)
}
  0x44   :  { %100 = dma.hbm_to_vmem [thread:$0]  %s1845_s8, 1024, %s95_s27, [#allocation12], %s1644_s20, %s1644_s20, %s1645_s21  }
  0x45   :  { %1631 = dma.done.wait [#allocation3], 256  }
  0x46   :  { %1632 = vsyncadd [#allocation3], 4294967040 }
  0x47   :  { %1633 = dma.done.wait [#allocation6], 2176  }
  0x48   :  { %1634 = vsyncadd [#allocation6], 4294965120 }
  0x49   :  { %1635 = dma.done.wait [#allocation9], 3072  }
  0x4a   :  { %1636 = vsyncadd [#allocation9], 4294964224 }
  0x4b   :  { %1637 = dma.done.wait [#allocation12], 1024  }
  0x4c   :  { %1638 = vsyncadd [#allocation12], 4294966272  ;;  %v1653_v0 = vmov 0   ;;  %v1402_v1 = vld [vmem:[#allocation7 + $0x74] ss:$8 sps:$4 sm:$0xff]   ;;  %v1757_v17 = vld [vmem:[#allocation2] sm:$0xff] }
  0x4d   :  { %259 = vmatprep.mubr.bf16.mxu0 %v1653_v0  ;;  %313 = vmatprep.mubr.bf16.mxu1 %v1653_v0  ;;  %v1404_v2 = vld [vmem:[#allocation7 + $0x70] ss:$8 sps:$4 sm:$0xff]   ;;  %v1405_v3 = vld [vmem:[#allocation7 + $0x64] ss:$8 sps:$4 sm:$0xff]   ;;  %v1407_v4 = vld [vmem:[#allocation7 + $0x60] ss:$8 sps:$4 sm:$0xff]  }
  0x4e   :  { %227 = vmatprep.subr.bf16.mxu0 %v1402_v1  ;;  %v1408_v5 = vld [vmem:[#allocation7 + $0x54] ss:$8 sps:$4 sm:$0xff]   ;;  %v1410_v6 = vld [vmem:[#allocation7 + $0x50] ss:$8 sps:$4 sm:$0xff]   ;;  %v1411_v7 = vld [vmem:[#allocation7 + $0x44] ss:$8 sps:$4 sm:$0xff]  }
  0x4f   :  { %228 = vmatpush1.bf16.msra.mxu0 %v1404_v2  ;;  %v1413_v8 = vld [vmem:[#allocation7 + $0x40] ss:$8 sps:$4 sm:$0xff]   ;;  %v1414_v9 = vld [vmem:[#allocation7 + $0x34] ss:$8 sps:$4 sm:$0xff]   ;;  %v1416_v10 = vld [vmem:[#allocation7 + $0x30] ss:$8 sps:$4 sm:$0xff]  }
  0x50   :  { %229 = vmatprep.subr.bf16.mxu0 %v1405_v3  ;;  %v1417_v11 = vld [vmem:[#allocation7 + $0x24] ss:$8 sps:$4 sm:$0xff]   ;;  %v1419_v12 = vld [vmem:[#allocation7 + $0x20] ss:$8 sps:$4 sm:$0xff]   ;;  %v1420_v13 = vld [vmem:[#allocation7 + $0x14] ss:$8 sps:$4 sm:$0xff]  }
  0x51   :  { %v1422_v14 = vld [vmem:[#allocation7 + $0x10] ss:$8 sps:$4 sm:$0xff]   ;;  %v1423_v15 = vld [vmem:[#allocation7 + $0x4] ss:$8 sps:$4 sm:$0xff]   ;;  %v1425_v16 = vld [vmem:[#allocation7] ss:$8 sps:$4 sm:$0xff]  }
  0x52   :  { %v1759_v18 = vld [vmem:[#allocation2 + $0x8] sm:$0xff]  ;;  %v1427_v25 = vld [vmem:[#allocation8 + $0x78] sm:$0xff]   ;;  %vm277_vm0 = vcmask 130048   ;;  %v1431_v31 = vld [vmem:[#allocation8 + $0x68] sm:$0xff]   ;;  %v1654_v57 = vmov 0.0   ;;  %vm1655_vm5 = vmmov 0  }
  0x53   :  { %230 = vmatpush1.bf16.msra.mxu0 %v1407_v4  ;;  %v124_v19 = vpack.c.bf16 %v1759_v18, %v1757_v17  ;;  %v1763_v27 = vld [vmem:[#allocation5] sm:$0xff]   ;;  %v1429_v29 = vld [vmem:[#allocation8 + $0x70] sm:$0xff]   ;;  %v1432_v32 = vld [vmem:[#allocation8 + $0x28] sm:$0xff]   ;;  %vm689_vm6 = vcmask 64512   ;;  %vm1054_vm7 = vcmask 1041409   ;;  %s1656_s30 = smov [#allocation13]  }
  0x54   :  { %231 = vmatprep.subr.bf16.mxu0 %v1408_v5  ;;  %v1428_v28 = vld [vmem:[#allocation8 + $0x38] sm:$0xff]   ;;  %v1430_v30 = vld [vmem:[#allocation8 + $0x30] sm:$0xff]   ;;  %v1433_v33 = vld [vmem:[#allocation8 + $0x60] sm:$0xff]   ;;  %s1178_s1 = sshll.u32 %s1656_s30, 4  ;;  %s1179_s1 = int_to_ptr.vmem [resolvable:$true] %s1178_s1 }
  0x55   :  { %v1434_v34 = vld [vmem:[#allocation8 + $0x20] sm:$0xff]   ;;  %v1435_v35 = vld [vmem:[#allocation8 + $0x58] sm:$0xff]   ;;  %v1437_v37 = vld [vmem:[#allocation8 + $0x50] sm:$0xff]   ;;  %s1591_s14 = scalar_lea.vmem %s1179_s1, 256  ;;  %p1596_p3 = scmp.lt.s32.totalorder %s1179_s1, %s1179_s1 }
  0x56   :  { %v1436_v36 = vld [vmem:[#allocation8 + $0x18] sm:$0xff]   ;;  %v1438_v38 = vld [vmem:[#allocation8 + $0x10] sm:$0xff]   ;;  %v1439_v39 = vld [vmem:[#allocation8 + $0x48] sm:$0xff]   ;;  %p1592_p2 = scmp.ne.s32.totalorder %s1179_s1, %s1591_s14  ;;  %p1597_p4 = scmp.lt.s32.totalorder %s1591_s14, %s1591_s14 }
  0x57   :  { %232 = vmatpush1.bf16.msra.mxu0 %v1410_v6  ;;  %v1440_v40 = vld [vmem:[#allocation8 + $0x8] sm:$0xff]   ;;  %v1441_v41 = vld [vmem:[#allocation8 + $0x40] sm:$0xff]  }
  0x58   :  { %233 = vmatprep.subr.bf16.mxu0 %v1411_v7  ;;  %v1442_v42 = vld [vmem:[#allocation8] sm:$0xff]   ;;  %p1598_p5 = por %p1597_p4, %p1596_p3 }
  0x5a   :  { %p1599_p6 = pnand %p1598_p5, %p1592_p2 }
  0x5b   :  { %234 = vmatpush1.bf16.msra.mxu0 %v1413_v8 }
  0x5c   :  { %235 = vmatprep.subr.bf16.mxu0 %v1414_v9 }
  0x5f   :  { %236 = vmatpush1.bf16.msra.mxu0 %v1416_v10 }
  0x60   :  { %237 = vmatprep.subr.bf16.mxu0 %v1417_v11 }
  0x63   :  { %238 = vmatpush1.bf16.msra.mxu0 %v1419_v12 }
  0x64   :  { %239 = vmatprep.subr.bf16.mxu0 %v1420_v13 }
  0x67   :  { %240 = vmatpush1.bf16.msra.mxu0 %v1422_v14 }
  0x68   :  { %241 = vmatprep.subr.bf16.mxu0 %v1423_v15 }
  0x6b   :  { %242 = vmatpush1.bf16.msra.mxu0 %v1425_v16 }
  0x6c   :  { %1318 = vmatprep.subr.bf16.mxu0 %v1654_v57 }
  0x6e   :  { %260 = vmatmul.mubr.bf16.vlgmr.msra.gmra.mxu0 %v124_v19 }
  0x6f   :  { %1320 = vmatprep.mubr.msk.bf16.mxu0 %vm1655_vm5, %v1654_v57 }
 0x12e   :  { %v261_v20 = vpop.f32.mrf.mxu0 }
 0x130   :  { %v263_v21 = vpop.f32.mrf.mxu0 }
 0x132   :  { %v265_v22 = vpop.f32.mrf.mxu0 }
 0x133   :  { %v270_v26 = vpack.c.bf16 %v265_v22, %v261_v20 }
 0x134   :  { %v267_v23 = vpop.f32.mrf.mxu0 }
 0x135   :  { %v271_v24 = vpack.c.bf16 %v267_v23, %v263_v21 }
 0x137   :  { %295 = vmatprep.subr.bf16.mxu1 %v271_v24 }
 0x138   :  { %296 = vmatpush1.bf16.msra.mxu1 %v270_v26 }
 0x139   :  { %1268 = vmatprep.subr.bf16.mxu1 %v1427_v25 }
 0x13b   :  { %1226 = vmatmul.mubr.msk.bf16.vlgmr.msra.gmra.mxu1 %vm277_vm0, %v1763_v27 }
 0x13c   :  { %1269 = vmatpush3.bf16.msra.mxu1 %v1428_v28 }
 0x13d   :  { %1270 = vmatprep.subr.bf16.mxu1 %v1429_v29 }
 0x140   :  { %1271 = vmatpush3.bf16.msra.mxu1 %v1430_v30 }
 0x141   :  { %1272 = vmatprep.subr.bf16.mxu1 %v1431_v31 }
 0x144   :  { %1273 = vmatpush3.bf16.msra.mxu1 %v1432_v32 }
 0x145   :  { %1274 = vmatprep.subr.bf16.mxu1 %v1433_v33 }
 0x148   :  { %1275 = vmatpush3.bf16.msra.mxu1 %v1434_v34 }
 0x149   :  { %1276 = vmatprep.subr.bf16.mxu1 %v1435_v35  ;;  %v1443_v35 = vld [vmem:[#allocation10 + $0x38] sm:$0xff]  }
 0x14c   :  { %1277 = vmatpush3.bf16.msra.mxu1 %v1436_v36 }
 0x14d   :  { %1278 = vmatprep.subr.bf16.mxu1 %v1437_v37 }
 0x150   :  { %1279 = vmatpush3.bf16.msra.mxu1 %v1438_v38 }
 0x151   :  { %1280 = vmatprep.subr.bf16.mxu1 %v1439_v39 }
 0x154   :  { %1281 = vmatpush3.bf16.msra.mxu1 %v1440_v40 }
 0x155   :  { %1282 = vmatprep.subr.bf16.mxu1 %v1441_v41 }
 0x158   :  { %1283 = vmatpush3.bf16.msra.mxu1 %v1442_v42 }
 0x159   :  { %1324 = vmatprep.subr.mxu1 %v1654_v57 }
 0x1fb   :  { %v315_v43 = vpop.f32.mrf.mxu1 }
 0x1fc   :  { %v328_v48 = vmul.f32 0.2, %v315_v43  ;;  %vm324_vm3 = vcmp.gt.f32.partialorder %v315_v43, 0.0 }
 0x1fd   :  { %v317_v44 = vpop.f32.mrf.mxu1 }
 0x1fe   :  { %v329_v46 = vmul.f32 0.2, %v317_v44  ;;  %vm325_vm2 = vcmp.gt.f32.partialorder %v317_v44, 0.0  ;;  %v332_v54 = vsel %vm324_vm3, %v315_v43, %v328_v48  ;;  %v1444_v43 = vld [vmem:[#allocation10 + $0x30] sm:$0xff]  }
 0x1ff   :  { %v319_v45 = vpop.f32.mrf.mxu1  ;;  %v1450_v48 = vld [vmem:[#allocation11 + $0x30] sm:$0xff]  }
 0x200   :  { %vm326_vm1 = vcmp.gt.f32.partialorder %v319_v45, 0.0  ;;  %v330_v47 = vmul.f32 0.2, %v319_v45  ;;  %v333_v52 = vsel %vm325_vm2, %v317_v44, %v329_v46  ;;  %v1446_v44 = vld [vmem:[#allocation10 + $0x20] sm:$0xff]   ;;  %v1448_v46 = vld [vmem:[#allocation11 + $0x38] sm:$0xff]  }
 0x201   :  { %v321_v49 = vpop.f32.mrf.mxu1 }
 0x202   :  { %vm327_vm4 = vcmp.gt.f32.partialorder %v321_v49, 0.0  ;;  %v331_v50 = vmul.f32 0.2, %v321_v49  ;;  %v334_v51 = vsel %vm326_vm1, %v319_v45, %v330_v47  ;;  %v1447_v45 = vld [vmem:[#allocation10 + $0x18] sm:$0xff]   ;;  %v1449_v47 = vld [vmem:[#allocation10 + $0x10] sm:$0xff]  }
 0x203   :  { %v336_v56 = vpack.c.bf16 %v334_v51, %v332_v54  ;;  %v1453_v51 = vld [vmem:[#allocation10] sm:$0xff]   ;;  %v1456_v54 = vld [vmem:[#allocation11 + $0x10] sm:$0xff]  }
 0x204   :  { %v335_v53 = vsel %vm327_vm4, %v321_v49, %v331_v50  ;;  %v1451_v49 = vld [vmem:[#allocation10 + $0x8] sm:$0xff]  }
 0x205   :  { %v337_v55 = vpack.c.bf16 %v335_v53, %v333_v52  ;;  %v1452_v50 = vld [vmem:[#allocation11 + $0x28] sm:$0xff]   ;;  %v1454_v52 = vld [vmem:[#allocation11 + $0x20] sm:$0xff]   ;;  %v1455_v53 = vld [vmem:[#allocation11 + $0x18] sm:$0xff]  }
 0x207   :  { %498 = vmatprep.mubr.bf16.mxu1 %v337_v55  ;;  %v1457_v55 = vld [vmem:[#allocation11 + $0x8] sm:$0xff]  }
 0x208   :  { %499 = vmatmul.mubr.bf16.vlgmr.msra.gmra.mxu1 %v336_v56  ;;  %v1458_v56 = vld [vmem:[#allocation11] sm:$0xff]  }
 0x209   :  { %1326 = vmatprep.mubr.msk.f32.mxu1 %vm1655_vm5, %v1654_v57 }
 0x2c8   :  { %v1284_v58 = vpop.f32.mrf.mxu1 }
 0x2ca   :  { %v1285_v59 = vpop.f32.mrf.mxu1 }
 0x2cb   :  { %v1286_v62 = vadd.f32 %v1285_v59, %v1284_v58 }
 0x2cc   :  { %v1287_v60 = vpop.f32.mrf.mxu1 }
 0x2ce   :  { %v1288_v61 = vpop.f32.mrf.mxu1 }
 0x2cf   :  { %v1289_v63 = vadd.f32 %v1288_v61, %v1287_v60 }
 0x2d1   :  { %v507_v0 = vpack.c.bf16 %v1289_v63, %v1286_v62 }
 0x2d3   :  { %1319 = vmatpush3.bf16.msra.mxu0 %v507_v0 }
 0x2d4   :  { %1329 = vmatprep.subr.mxu0 %v1654_v57 }
 0x2d6   :  { %1321 = vmatmul.mubr.msk.bf16.vlgmr.msra.gmra.mxu0 %vm277_vm0, %v1763_v27 }
 0x2d7   :  { %1331 = vmatprep.mubr.msk.f32.mxu0 %vm1655_vm5, %v1654_v57 }
 0x396   :  { %v542_v1 = vpop.f32.mrf.mxu0 }
 0x397   :  { %1325 = vmatpush3.xpose.msra.mxu1 %v542_v1  ;;  %v1246_v1 = vld [vmem:[%s1841_s4] ss:$0 sm:$0xff] }
 0x398   :  { %v1322_v2 = vpop.f32.mrf.mxu0  ;;  %1334 = vmatprep.subr.mxu1 %v1654_v57 }
 0x39a   :  { %v545_v3 = vpop.f32.mrf.mxu0  ;;  %1327 = vmatmul.mubr.f32.vlgmr.msra.gmra.mxu1 %v1757_v17 }
 0x39b   :  { %1330 = vmatpush3.xpose.msra.mxu0 %v545_v3  ;;  %1335 = vmatpush3.msra.mxu1 %v1757_v17  ;;  %v1247_v3 = vld [vmem:[%s1842_s5] ss:$0 sm:$0xff] }
 0x39c   :  { %v1323_v4 = vpop.f32.mrf.mxu0  ;;  %1336 = vmatprep.mubr.msk.f32.mxu1 %vm1655_vm5, %v1654_v57  ;;  %1339 = vmatprep.subr.mxu0 %v1654_v57 }
 0x39d   :  { %1344 = vmatprep.subr.bf16.mxu1 %v1654_v57 }
 0x39e   :  { %1332 = vmatmul.mubr.f32.vlgmr.msra.gmra.mxu0 %v1759_v18 }
 0x39f   :  { %1340 = vmatpush3.msra.mxu0 %v1759_v18  ;;  %1341 = vmatprep.mubr.msk.f32.mxu0 %vm1655_vm5, %v1654_v57 }
 0x3a0   :  { %1364 = vmatprep.subr.bf16.mxu0 %v1654_v57 }
 0x45a   :  { %v615_v5 = vpop.f32.mrf.mxu1 }
 0x45b   :  { %v690_v6 = vsel %vm689_vm6, %v615_v5, -inf }
 0x45c   :  { %691 = vmax.xlane.f32.xlu0 %v690_v6  ;;  %v1328_v7 = vpop.f32.mrf.mxu1 }
 0x45e   :  { %v685_v8 = vpop.f32.mrf.mxu0 }
 0x45f   :  { %v693_v9 = vsel %vm689_vm6, %v685_v8, -inf }
 0x460   :  { %694 = vmax.xlane.f32.xlu0 %v693_v9  ;;  %v1333_v10 = vpop.f32.mrf.mxu0 }
 0x4e5   :  { %v692_v11 = vpop.xlane.xlu0 %691 }
 0x4e6   :  { %v696_v12 = vsub.f32 %v615_v5, %v692_v11 }
 0x4e8   :  { %v698_v13 = vmul.f32 1.442695, %v696_v12 }
 0x4e9   :  { %v695_v14 = vpop.xlane.xlu0 %694 }
 0x4ea   :  { %1459 = vpow2.f32 %v698_v13  ;;  %v697_v15 = vsub.f32 %v685_v8, %v695_v14 }
 0x4ec   :  { %v700_v16 = vmul.f32 1.442695, %v697_v15 }
 0x4ee   :  { %1461 = vpow2.f32 %v700_v16 }
 0x4f7   :  { %v1460_v19 = vpop.eup %1459 }
 0x4f8   :  { %v702_v20 = vsel %vm689_vm6, %v1460_v19, 0.0 }
 0x4f9   :  { %703 = vadd.xlane.f32.xlu1 %v702_v20 }
 0x4fb   :  { %v1462_v21 = vpop.eup %1461 }
 0x4fc   :  { %v705_v22 = vsel %vm689_vm6, %v1462_v21, 0.0 }
 0x4fd   :  { %706 = vadd.xlane.f32.xlu1 %v705_v22 }
 0x582   :  { %v704_v23 = vpop.xlane.xlu1 %703 }
 0x583   :  { %1463 = vrcp.f32 %v704_v23 }
 0x586   :  { %v707_v24 = vpop.xlane.xlu1 %706 }
 0x587   :  { %1465 = vrcp.f32 %v707_v24 }
 0x590   :  { %v1464_v25 = vpop.eup %1463 }
 0x591   :  { %v710_v26 = vmul.f32 %v1464_v25, %v1460_v19 }
 0x593   :  { %1337 = vmatmul.mubr.msk.f32.vlgmr.msra.gmra.mxu1 %vm689_vm6, %v710_v26 }
 0x594   :  { %v1466_v27 = vpop.eup %1465  ;;  %1360 = vmatprep.mubr.msk.bf16.mxu1 %vm1655_vm5, %v1654_v57  ;;  %1345 = vmatpush3.bf16.msra.mxu1 %v1443_v35 }
 0x595   :  { %v711_v28 = vmul.f32 %v1466_v27, %v1462_v21  ;;  %1346 = vmatprep.subr.bf16.mxu1 %v1654_v57 }
 0x597   :  { %1342 = vmatmul.mubr.msk.f32.vlgmr.msra.gmra.mxu0 %vm689_vm6, %v711_v28 }
 0x598   :  { %1380 = vmatprep.mubr.msk.bf16.mxu0 %vm1655_vm5, %v1654_v57  ;;  %1347 = vmatpush3.bf16.msra.mxu1 %v1444_v43 }
 0x599   :  { %1348 = vmatprep.subr.bf16.mxu1 %v1654_v57  ;;  %1365 = vmatpush3.bf16.msra.mxu0 %v1448_v46 }
 0x59a   :  { %1366 = vmatprep.subr.bf16.mxu0 %v1654_v57 }
 0x59d   :  { %1367 = vmatpush3.bf16.msra.mxu0 %v1450_v48 }
 0x59e   :  { %1368 = vmatprep.subr.bf16.mxu0 %v1654_v57 }
 0x5a1   :  { %1369 = vmatpush3.bf16.msra.mxu0 %v1452_v50 }
 0x5a2   :  { %1370 = vmatprep.subr.bf16.mxu0 %v1654_v57 }
 0x5a5   :  { %1371 = vmatpush3.bf16.msra.mxu0 %v1454_v52 }
 0x5a6   :  { %1372 = vmatprep.subr.bf16.mxu0 %v1654_v57 }
 0x5a9   :  { %1373 = vmatpush3.bf16.msra.mxu0 %v1455_v53 }
 0x5aa   :  { %1374 = vmatprep.subr.bf16.mxu0 %v1654_v57 }
 0x5ad   :  { %1375 = vmatpush3.bf16.msra.mxu0 %v1456_v54 }
 0x5ae   :  { %1376 = vmatprep.subr.bf16.mxu0 %v1654_v57 }
 0x5b1   :  { %1377 = vmatpush3.bf16.msra.mxu0 %v1457_v55 }
 0x5b2   :  { %1378 = vmatprep.subr.bf16.mxu0 %v1654_v57 }
 0x5b5   :  { %1379 = vmatpush3.bf16.msra.mxu0 %v1458_v56 }
 0x653   :  { %v781_v29 = vpop.f32.mrf.mxu1 }
 0x654   :  { %v782_v30 = vadd.f32 %v781_v29, %v1757_v17 }
 0x655   :  { %v1338_v31 = vpop.f32.mrf.mxu1 }
 0x656   :  { %858 = vadd.xlane.f32.xlu0 %v782_v30 }
 0x657   :  { %v854_v32 = vpop.f32.mrf.mxu0 }
 0x658   :  { %v855_v33 = vadd.f32 %v854_v32, %v1759_v18  ;;  %v1445_v18 = vld [vmem:[#allocation10 + $0x28] sm:$0xff]  }
 0x659   :  { %v1343_v34 = vpop.f32.mrf.mxu0  ;;  %1349 = vmatpush3.bf16.msra.mxu1 %v1445_v18  ;;  %v1248_v32 = vld [vmem:[%s1844_s7] ss:$0 sm:$0xff] }
 0x65a   :  { %860 = vadd.xlane.f32.xlu1 %v855_v33  ;;  %1350 = vmatprep.subr.bf16.mxu1 %v1654_v57 }
 0x65d   :  { %1351 = vmatpush3.bf16.msra.mxu1 %v1446_v44 }
 0x65e   :  { %1352 = vmatprep.subr.bf16.mxu1 %v1654_v57 }
 0x661   :  { %1353 = vmatpush3.bf16.msra.mxu1 %v1447_v45 }
 0x662   :  { %1354 = vmatprep.subr.bf16.mxu1 %v1654_v57 }
 0x665   :  { %1355 = vmatpush3.bf16.msra.mxu1 %v1449_v47 }
 0x666   :  { %1356 = vmatprep.subr.bf16.mxu1 %v1654_v57 }
 0x669   :  { %1357 = vmatpush3.bf16.msra.mxu1 %v1451_v49 }
 0x66a   :  { %1358 = vmatprep.subr.bf16.mxu1 %v1654_v57 }
 0x66d   :  { %1359 = vmatpush3.bf16.msra.mxu1 %v1453_v51 }
 0x6df   :  { %v859_v36 = vpop.xlane.xlu0 %858 }
 0x6e0   :  { %v863_v37 = vmul.f32 0.0078125, %v859_v36 }
 0x6e2   :  { %v865_v38 = vsub.f32 %v782_v30, %v863_v37 }
 0x6e3   :  { %v861_v39 = vpop.xlane.xlu1 %860 }
 0x6e4   :  { %v864_v40 = vmul.f32 0.0078125, %v861_v39  ;;  %v867_v41 = vmul.f32 %v865_v38, %v865_v38 }
 0x6e6   :  { %v866_v42 = vsub.f32 %v855_v33, %v864_v40  ;;  %869 = vadd.xlane.f32.xlu0 %v867_v41 }
 0x6e8   :  { %v868_v17 = vmul.f32 %v866_v42, %v866_v42 }
 0x6ea   :  { %871 = vadd.xlane.f32.xlu1 %v868_v17 }
 0x76f   :  { %v870_v58 = vpop.xlane.xlu0 %869 }
 0x770   :  { %v873_v59 = vmul.f32 0.0078125, %v870_v58 }
 0x772   :  { %v875_v60 = vadd.f32 1e-05, %v873_v59 }
 0x773   :  { %v872_v61 = vpop.xlane.xlu1 %871 }
 0x774   :  { %1467 = vrsqrt.f32 %v875_v60  ;;  %v874_v62 = vmul.f32 0.0078125, %v872_v61 }
 0x776   :  { %v876_v63 = vadd.f32 1e-05, %v874_v62 }
 0x778   :  { %1469 = vrsqrt.f32 %v876_v63 }
 0x781   :  { %v1468_v0 = vpop.eup %1467 }
 0x782   :  { %v879_v2 = vmul.f32 %v1468_v0, %v865_v38 }
 0x784   :  { %v887_v57 = vmul.f32 %v1246_v1, %v879_v2 }
 0x785   :  { %v1470_v4 = vpop.eup %1469 }
 0x786   :  { %v880_v5 = vmul.f32 %v1470_v4, %v866_v42  ;;  %v895_v6 = vadd.f32 %v1247_v3, %v887_v57 }
 0x788   :  { %v888_v7 = vmul.f32 %v1246_v1, %v880_v5  ;;  %v1011_v8 = vrot.slane %v895_v6, 4 }
 0x78a   :  { %v896_v9 = vadd.f32 %v1247_v3, %v888_v7  ;;  %v1012_v10 = vadd.f32 %v1011_v8, %v895_v6 }
 0x78c   :  { %v897_v11 = vpack.c.bf16 %v896_v9, %v895_v6  ;;  %v1017_v12 = vrot.slane %v896_v9, 4  ;;  %v1013_v13 = vrot.slane %v1012_v10, 2 }
 0x78e   :  { %1361 = vmatmul.mubr.bf16.vlgmr.msra.gmra.mxu1 %v897_v11  ;;  %v1018_v14 = vadd.f32 %v1017_v12, %v896_v9  ;;  %v1014_v15 = vadd.f32 %v1013_v13, %v1012_v10 }
 0x790   :  { %v1015_v16 = vrot.slane %v1014_v15, 1  ;;  %v1019_v19 = vrot.slane %v1018_v14, 2 }
 0x792   :  { %v1016_v20 = vadd.f32 %v1015_v16, %v1014_v15  ;;  %v1020_v21 = vadd.f32 %v1019_v19, %v1018_v14 }
 0x794   :  { %v1021_v22 = vrot.slane %v1020_v21, 1  ;;  %v1024_v23 = vmul.f32 0.125, %v1016_v20 }
 0x796   :  { %v1022_v24 = vadd.f32 %v1021_v22, %v1020_v21  ;;  %v1026_v26 = vpack.c.bf16 %v1024_v23, %v1024_v23 }
 0x798   :  { %v1025_v25 = vmul.f32 0.125, %v1022_v24  ;;  %v1052_v28 = vunpack.c.l.b16 %v1026_v26 }
 0x79a   :  { %v1027_v27 = vpack.c.bf16 %v1025_v25, %v1025_v25 }
 0x79c   :  { %v1053_v29 = vunpack.c.l.b16 %v1027_v27 }
 0x79e   :  { %v1055_v30 = vsel %vm1054_vm7, %v1053_v29, %v1052_v28 }
 0x79f   :  { %v1056_v31 = vpack.c.b16 %v1055_v30, %v1055_v30 }
 0x7a1   :  { %1381 = vmatmul.mubr.bf16.vlgmr.msra.gmra.mxu0 %v1056_v31 }
 0x84e   :  { %v1002_v33 = vpop.f32.mrf.mxu1 }
 0x84f   :  { %v1003_v34 = vadd.f32 %v1248_v32, %v1002_v33 }
 0x850   :  { %v1362_v35 = vpop.f32.mrf.mxu1 }
 0x851   :  { %1009 = vst [vmem:[#allocation13] sm:$0xff] %v1003_v34 }
 0x852   :  { %v1005_v36 = vpop.f32.mrf.mxu1 }
 0x853   :  { %v1006_v37 = vadd.f32 %v1248_v32, %v1005_v36 }
 0x854   :  { %v1363_v38 = vpop.f32.mrf.mxu1 }
 0x855   :  { %1010 = vst [vmem:[#allocation13 + $0x8] sm:$0xff] %v1006_v37 }
 0x856   :  { %1602 = shalt.err (!%p1599_p6)
}
 0x857   :  { %1184 = dma.vmem_to_hbm [thread:$0]  %s1179_s1, 256, %s1847_s10, [#allocation4], %s1648_s12, %s1648_s12, %s1649_s13   ;;  %v1657_v39 = vmov 1966171168   ;;  %v1150_v41 = vlaneseq }
 0x858   :  { %v1148_v40 = vunpack.c.l.s4 %v1657_v39  ;;  %v1257_v43 = vld [vmem:[%s1846_s9] ss:$0 sm:$0xff]  ;;  %s1658_s3 = smov [#allocation14]  }
 0x859   :  { %v1151_v17 = vshrl.u32 %v1150_v41, 7  ;;  %s1190_s18 = sshll.u32 %s1658_s3, 4  ;;  %s1191_s18 = int_to_ptr.vmem [resolvable:$true] %s1190_s18 }
 0x85a   :  { %v1149_v42 = vunpack.c.0.s8 %v1148_v40  ;;  %s1611_s10 = scalar_lea.vmem %s1191_s18, 32  ;;  %p1616_p8 = scmp.lt.s32.totalorder %s1191_s18, %s1191_s18 }
 0x85b   :  { %p1612_p7 = scmp.ne.s32.totalorder %s1191_s18, %s1611_s10  ;;  %p1617_p9 = scmp.lt.s32.totalorder %s1611_s10, %s1611_s10 }
 0x85c   :  { %v1152_v18 = vsub.s32 %v1149_v42, %v1151_v17 }
 0x85d   :  { %p1618_p10 = por %p1617_p9, %p1616_p8 }
 0x85f   :  { %p1619_p11 = pnand %p1618_p10, %p1612_p7 }
 0x861   :  { %v1140_v44 = vpop.f32.mrf.mxu0 }
 0x862   :  { %v1141_v45 = vadd.f32 %v1257_v43, %v1140_v44 }
 0x863   :  { %v1382_v46 = vpop.f32.mrf.mxu0 }
 0x864   :  { %v1153_v47 = vrot.slane %v1141_v45, %v1152_v18 }
 0x865   :  { %v1143_v48 = vpop.f32.mrf.mxu0 }
 0x866   :  { %v1154_v49 = vcombine.high %v1153_v47, %v1153_v47  ;;  %1266 = vst.sshfl [vmem:[#allocation14] sm:$0x1 pattern:$0x73625140] %v1153_v47 }
 0x867   :  { %v1383_v50 = vpop.f32.mrf.mxu0 }
 0x868   :  { %1267 = vst.sshfl [vmem:[#allocation14 + $0x1] sm:$0x1 pattern:$0x73625140] %v1154_v49 }
 0x869   :  { %1622 = shalt.err (!%p1619_p11)
}
 0x86a   :  { %s1659_s9 = smov 16   ;;  %s1660_s12 = smov 1  }
 0x86b   :  { %1196 = dma.vmem_to_hbm [thread:$0]  %s1191_s18, 32, %s1848_s11, [#allocation15], %s1659_s9, %s1659_s9, %s1660_s12  }
 0x86c   :  { %1639 = dma.done.wait [#allocation4], 256  }
 0x86d   :  { %1640 = vsyncadd [#allocation4], 4294967040 }
 0x86e   :  { %1641 = dma.done.wait [#allocation15], 32  }
 0x86f   :  { %1642 = vsyncadd [#allocation15], 4294967264 }
 0x870   :  { %1203 = vsyncpa [#allocation3], 1 }
 0x871   :  { %1204 = vsyncpa [#allocation6], 1 }
 0x872   :  { %1205 = vsyncpa [#allocation9], 1 }
 0x873   :  { %1206 = vsyncpa [#allocation12], 1 }
 0x874   :  { %1207 = vsyncpa [#allocation4], 1 }
 0x875   :  { %1208 = vsyncpa [#allocation15], 1 }

// kernel: tpu_custom_call.1
= control target key start
LH: loop header
LB: loop body
LE: loop exit
PB: predicated region body
PF: predicated region fallthrough
CT: control target
= control target key end

     0   :  { %17 = vsyncpa [#allocation3], 0  ;;  %s1837_s0 = inlined_call_operand.hbm [shape: f32[2,8,128], index: 0, kind: input, shape index: {}]   ;;  %s1838_s1 = inlined_call_operand.hbm [shape: bf16[16,16], index: 1, kind: input, shape index: {}]   ;;  %s1839_s2 = inlined_call_operand.hbm [shape: bf16[128,256], index: 2, kind: input, shape index: {}]   ;;  %s1840_s3 = inlined_call_operand.hbm [shape: bf16[256,128], index: 3, kind: input, shape index: {}]   ;;  %s1841_s4 = inlined_call_operand.vmem [shape: f32[1,128], index: 4, kind: input, shape index: {}]   ;;  %s1842_s5 = inlined_call_operand.vmem [shape: f32[1,128], index: 5, kind: input, shape index: {}]   ;;  %s1843_s6 = inlined_call_operand.hbm [shape: bf16[128,128], index: 6, kind: input, shape index: {}]   ;;  %s1844_s7 = inlined_call_operand.vmem [shape: f32[1,128], index: 7, kind: input, shape index: {}]   ;;  %s1845_s8 = inlined_call_operand.hbm [shape: bf16[128,128], index: 8, kind: input, shape index: {}]   ;;  %s1846_s9 = inlined_call_operand.vmem [shape: f32[1,128], index: 9, kind: input, shape index: {}]   ;;  %s1847_s10 = inlined_call_operand.hbm [shape: f32[2,8,128], index: 10, kind: output, shape index: {0}]   ;;  %s1848_s11 = inlined_call_operand.hbm [shape: f32[2,1,128], index: 11, kind: output, shape index: {1}]  }
   0x1   :  { %18 = vsyncpa [#allocation6], 0 }
   0x2   :  { %19 = vsyncpa [#allocation9], 0 }
   0x3   :  { %20 = vsyncpa [#allocation12], 0 }
   0x4   :  { %21 = vsyncpa [#allocation4], 0 }
   0x5   :  { %22 = vsyncpa [#allocation15], 0  ;;  %s1643_s17 = smov [#allocation5]  }
   0x6   :  { %s40_s18 = sshll.u32 %s1643_s17, 4  ;;  %s41_s18 = int_to_ptr.vmem [resolvable:$true] %s40_s18 }
   0x7   :  { %s1479_s19 = scalar_lea.vmem %s41_s18, 128  ;;  %p1484_p1 = scmp.lt.s32.totalorder %s41_s18, %s41_s18 }
   0x8   :  { %p1480_p0 = scmp.ne.s32.totalorder %s41_s18, %s1479_s19  ;;  %p1485_p2 = scmp.lt.s32.totalorder %s1479_s19, %s1479_s19 }
   0xa   :  { %p1486_p3 = por %p1485_p2, %p1484_p1 }
   0xc   :  { %p1487_p4 = pnand %p1486_p3, %p1480_p0 }
   0xe   :  { %1490 = shalt.err (!%p1487_p4)
}
   0xf   :  { %s1644_s20 = smov 64   ;;  %s1645_s21 = smov 4  }
  0x10   :  { %46 = dma.hbm_to_vmem [thread:$0]  %s1838_s1, 128, %s41_s18, [#allocation6], %s1644_s20, %s1644_s20, %s1645_s21  }
  0x11   :  { %s1646_s24 = smov [#allocation8]   ;;  %s1647_s26 = smov [#allocation2]  }
  0x12   :  { %s64_s25 = sshll.u32 %s1646_s24, 4  ;;  %s28_s27 = sshll.u32 %s1647_s26, 4  ;;  %s65_s25 = int_to_ptr.vmem [resolvable:$true] %s64_s25  ;;  %s29_s27 = int_to_ptr.vmem [resolvable:$true] %s28_s27 }
  0x13   :  { %s1499_s28 = scalar_lea.vmem %s65_s25, 2048  ;;  %p1504_p6 = scmp.lt.s32.totalorder %s65_s25, %s65_s25 }
  0x14   :  { %p1500_p5 = scmp.ne.s32.totalorder %s65_s25, %s1499_s28  ;;  %p1505_p7 = scmp.lt.s32.totalorder %s1499_s28, %s1499_s28 }
  0x16   :  { %p1506_p8 = por %p1505_p7, %p1504_p6 }
  0x18   :  { %p1507_p9 = pnand %p1506_p8, %p1500_p5 }
  0x1a   :  { %1510 = shalt.err (!%p1507_p9)
}
  0x1b   :  { %70 = dma.hbm_to_vmem [thread:$0]  %s1840_s3, 2048, %s65_s25, [#allocation9], %s1644_s20, %s1644_s20, %s1645_s21  }
  0x1c   :  { %s1519_s1 = scalar_lea.vmem %s29_s27, 256  ;;  %p1524_p11 = scmp.lt.s32.totalorder %s29_s27, %s29_s27 }
  0x1d   :  { %p1520_p10 = scmp.ne.s32.totalorder %s29_s27, %s1519_s1  ;;  %p1525_p12 = scmp.lt.s32.totalorder %s1519_s1, %s1519_s1 }
  0x1f   :  { %p1526_p13 = por %p1525_p12, %p1524_p11 }
  0x21   :  { %p1527_p0 = pnand %p1526_p13, %p1520_p10 }
  0x23   :  { %1530 = shalt.err (!%p1527_p0)
}
  0x24   :  { %s1648_s12 = smov 128   ;;  %s1649_s13 = smov 8  }
  0x25   :  { %34 = dma.hbm_to_vmem [thread:$0]  %s1837_s0, 256, %s29_s27, [#allocation3], %s1648_s12, %s1648_s12, %s1649_s13  }
  0x26   :  { %s1650_s16 = smov [#allocation7]   ;;  %s1651_s3 = smov [#allocation10]  }
  0x27   :  { %s52_s17 = sshll.u32 %s1650_s16, 4  ;;  %s80_s18 = sshll.u32 %s1651_s3, 4  ;;  %s53_s17 = int_to_ptr.vmem [resolvable:$true] %s52_s17  ;;  %s81_s18 = int_to_ptr.vmem [resolvable:$true] %s80_s18 }
  0x28   :  { %s1539_s19 = scalar_lea.vmem %s53_s17, 2048  ;;  %p1544_p2 = scmp.lt.s32.totalorder %s53_s17, %s53_s17 }
  0x29   :  { %p1540_p1 = scmp.ne.s32.totalorder %s53_s17, %s1539_s19  ;;  %p1545_p3 = scmp.lt.s32.totalorder %s1539_s19, %s1539_s19 }
  0x2b   :  { %p1546_p4 = por %p1545_p3, %p1544_p2 }
  0x2d   :  { %p1547_p5 = pnand %p1546_p4, %p1540_p1 }
  0x2f   :  { %1550 = shalt.err (!%p1547_p5)
}
  0x30   :  { %58 = dma.hbm_to_vmem [thread:$0]  %s1839_s2, 2048, %s53_s17, [#allocation6], %s1648_s12, %s1648_s12, %s1649_s13  }
  0x31   :  { %s1559_s0 = scalar_lea.vmem %s81_s18, 1024  ;;  %p1564_p7 = scmp.lt.s32.totalorder %s81_s18, %s81_s18 }
  0x32   :  { %p1560_p6 = scmp.ne.s32.totalorder %s81_s18, %s1559_s0  ;;  %p1565_p8 = scmp.lt.s32.totalorder %s1559_s0, %s1559_s0 }
  0x34   :  { %p1566_p9 = por %p1565_p8, %p1564_p7 }
  0x36   :  { %p1567_p10 = pnand %p1566_p9, %p1560_p6 }
  0x38   :  { %1570 = shalt.err (!%p1567_p10)
}
  0x39   :  { %86 = dma.hbm_to_vmem [thread:$0]  %s1843_s6, 1024, %s81_s18, [#allocation9], %s1644_s20, %s1644_s20, %s1645_s21  }
  0x3a   :  { %s1652_s26 = smov [#allocation11]  }
  0x3b   :  { %s94_s27 = sshll.u32 %s1652_s26, 4  ;;  %s95_s27 = int_to_ptr.vmem [resolvable:$true] %s94_s27 }
  0x3c   :  { %s1579_s28 = scalar_lea.vmem %s95_s27, 1024  ;;  %p1584_p12 = scmp.lt.s32.totalorder %s95_s27, %s95_s27 }
  0x3d   :  { %p1580_p11 = scmp.ne.s32.totalorder %s95_s27, %s1579_s28  ;;  %p1585_p13 = scmp.lt.s32.totalorder %s1579_s28, %s1579_s28 }
  0x3f   :  { %p1586_p0 = por %p1585_p13, %p1584_p12 }
  0x41   :  { %p1587_p1 = pnand %p1586_p0, %p1580_p11 }
  0x43   :  { %1590 = shalt.err (!%p1587_p1)
}
  0x44   :  { %100 = dma.hbm_to_vmem [thread:$0]  %s1845_s8, 1024, %s95_s27, [#allocation12], %s1644_s20, %s1644_s20, %s1645_s21  }
  0x45   :  { %1631 = dma.done.wait [#allocation3], 256  }
  0x46   :  { %1632 = vsyncadd [#allocation3], 4294967040 }
  0x47   :  { %1633 = dma.done.wait [#allocation6], 2176  }
  0x48   :  { %1634 = vsyncadd [#allocation6], 4294965120 }
  0x49   :  { %1635 = dma.done.wait [#allocation9], 3072  }
  0x4a   :  { %1636 = vsyncadd [#allocation9], 4294964224 }
  0x4b   :  { %1637 = dma.done.wait [#allocation12], 1024  }
  0x4c   :  { %1638 = vsyncadd [#allocation12], 4294966272  ;;  %v1653_v0 = vmov 0   ;;  %v1402_v1 = vld [vmem:[#allocation7 + $0x74] ss:$8 sps:$4 sm:$0xff]   ;;  %v1757_v17 = vld [vmem:[#allocation2] sm:$0xff] }
  0x4d   :  { %259 = vmatprep.mubr.bf16.mxu0 %v1653_v0  ;;  %313 = vmatprep.mubr.bf16.mxu1 %v1653_v0  ;;  %v1404_v2 = vld [vmem:[#allocation7 + $0x70] ss:$8 sps:$4 sm:$0xff]   ;;  %v1405_v3 = vld [vmem:[#allocation7 + $0x64] ss:$8 sps:$4 sm:$0xff]   ;;  %v1407_v4 = vld [vmem:[#allocation7 + $0x60] ss:$8 sps:$4 sm:$0xff]  }
  0x4e   :  { %227 = vmatprep.subr.bf16.mxu0 %v1402_v1  ;;  %v1408_v5 = vld [vmem:[#allocation7 + $0x54] ss:$8 sps:$4 sm:$0xff]   ;;  %v1410_v6 = vld [vmem:[#allocation7 + $0x50] ss:$8 sps:$4 sm:$0xff]   ;;  %v1411_v7 = vld [vmem:[#allocation7 + $0x44] ss:$8 sps:$4 sm:$0xff]  }
  0x4f   :  { %228 = vmatpush1.bf16.msra.mxu0 %v1404_v2  ;;  %v1413_v8 = vld [vmem:[#allocation7 + $0x40] ss:$8 sps:$4 sm:$0xff]   ;;  %v1414_v9 = vld [vmem:[#allocation7 + $0x34] ss:$8 sps:$4 sm:$0xff]   ;;  %v1416_v10 = vld [vmem:[#allocation7 + $0x30] ss:$8 sps:$4 sm:$0xff]  }
  0x50   :  { %229 = vmatprep.subr.bf16.mxu0 %v1405_v3  ;;  %v1417_v11 = vld [vmem:[#allocation7 + $0x24] ss:$8 sps:$4 sm:$0xff]   ;;  %v1419_v12 = vld [vmem:[#allocation7 + $0x20] ss:$8 sps:$4 sm:$0xff]   ;;  %v1420_v13 = vld [vmem:[#allocation7 + $0x14] ss:$8 sps:$4 sm:$0xff]  }
  0x51   :  { %v1422_v14 = vld [vmem:[#allocation7 + $0x10] ss:$8 sps:$4 sm:$0xff]   ;;  %v1423_v15 = vld [vmem:[#allocation7 + $0x4] ss:$8 sps:$4 sm:$0xff]   ;;  %v1425_v16 = vld [vmem:[#allocation7] ss:$8 sps:$4 sm:$0xff]  }
  0x52   :  { %v1759_v18 = vld [vmem:[#allocation2 + $0x8] sm:$0xff]  ;;  %v1427_v25 = vld [vmem:[#allocation8 + $0x78] sm:$0xff]   ;;  %vm277_vm0 = vcmask 130048   ;;  %v1431_v31 = vld [vmem:[#allocation8 + $0x68] sm:$0xff]   ;;  %v1654_v57 = vmov 0.0   ;;  %vm1655_vm5 = vmmov 0  }
  0x53   :  { %230 = vmatpush1.bf16.msra.mxu0 %v1407_v4  ;;  %v124_v19 = vpack.c.bf16 %v1759_v18, %v1757_v17  ;;  %v1763_v27 = vld [vmem:[#allocation5] sm:$0xff]   ;;  %v1429_v29 = vld [vmem:[#allocation8 + $0x70] sm:$0xff]   ;;  %v1432_v32 = vld [vmem:[#allocation8 + $0x28] sm:$0xff]   ;;  %vm689_vm6 = vcmask 64512   ;;  %vm1054_vm7 = vcmask 1041409   ;;  %s1656_s30 = smov [#allocation13]  }
  0x54   :  { %231 = vmatprep.subr.bf16.mxu0 %v1408_v5  ;;  %v1428_v28 = vld [vmem:[#allocation8 + $0x38] sm:$0xff]   ;;  %v1430_v30 = vld [vmem:[#allocation8 + $0x30] sm:$0xff]   ;;  %v1433_v33 = vld [vmem:[#allocation8 + $0x60] sm:$0xff]   ;;  %s1178_s1 = sshll.u32 %s1656_s30, 4  ;;  %s1179_s1 = int_to_ptr.vmem [resolvable:$true] %s1178_s1 }
  0x55   :  { %v1434_v34 = vld [vmem:[#allocation8 + $0x20] sm:$0xff]   ;;  %v1435_v35 = vld [vmem:[#allocation8 + $0x58] sm:$0xff]   ;;  %v1437_v37 = vld [vmem:[#allocation8 + $0x50] sm:$0xff]   ;;  %s1591_s14 = scalar_lea.vmem %s1179_s1, 256  ;;  %p1596_p3 = scmp.lt.s32.totalorder %s1179_s1, %s1179_s1 }
  0x56   :  { %v1436_v36 = vld [vmem:[#allocation8 + $0x18] sm:$0xff]   ;;  %v1438_v38 = vld [vmem:[#allocation8 + $0x10] sm:$0xff]   ;;  %v1439_v39 = vld [vmem:[#allocation8 + $0x48] sm:$0xff]   ;;  %p1592_p2 = scmp.ne.s32.totalorder %s1179_s1, %s1591_s14  ;;  %p1597_p4 = scmp.lt.s32.totalorder %s1591_s14, %s1591_s14 }
  0x57   :  { %232 = vmatpush1.bf16.msra.mxu0 %v1410_v6  ;;  %v1440_v40 = vld [vmem:[#allocation8 + $0x8] sm:$0xff]   ;;  %v1441_v41 = vld [vmem:[#allocation8 + $0x40] sm:$0xff]  }
  0x58   :  { %233 = vmatprep.subr.bf16.mxu0 %v1411_v7  ;;  %v1442_v42 = vld [vmem:[#allocation8] sm:$0xff]   ;;  %p1598_p5 = por %p1597_p4, %p1596_p3 }
  0x5a   :  { %p1599_p6 = pnand %p1598_p5, %p1592_p2 }
  0x5b   :  { %234 = vmatpush1.bf16.msra.mxu0 %v1413_v8 }
  0x5c   :  { %235 = vmatprep.subr.bf16.mxu0 %v1414_v9 }
  0x5f   :  { %236 = vmatpush1.bf16.msra.mxu0 %v1416_v10 }
  0x60   :  { %237 = vmatprep.subr.bf16.mxu0 %v1417_v11 }
  0x63   :  { %238 = vmatpush1.bf16.msra.mxu0 %v1419_v12 }
  0x64   :  { %239 = vmatprep.subr.bf16.mxu0 %v1420_v13 }
  0x67   :  { %240 = vmatpush1.bf16.msra.mxu0 %v1422_v14 }
  0x68   :  { %241 = vmatprep.subr.bf16.mxu0 %v1423_v15 }
  0x6b   :  { %242 = vmatpush1.bf16.msra.mxu0 %v1425_v16 }
  0x6c   :  { %1318 = vmatprep.subr.bf16.mxu0 %v1654_v57 }
  0x6e   :  { %260 = vmatmul.mubr.bf16.vlgmr.msra.gmra.mxu0 %v124_v19 }
  0x6f   :  { %1320 = vmatprep.mubr.msk.bf16.mxu0 %vm1655_vm5, %v1654_v57 }
 0x12e   :  { %v261_v20 = vpop.f32.mrf.mxu0 }
 0x130   :  { %v263_v21 = vpop.f32.mrf.mxu0 }
 0x132   :  { %v265_v22 = vpop.f32.mrf.mxu0 }
 0x133   :  { %v270_v26 = vpack.c.bf16 %v265_v22, %v261_v20 }
 0x134   :  { %v267_v23 = vpop.f32.mrf.mxu0 }
 0x135   :  { %v271_v24 = vpack.c.bf16 %v267_v23, %v263_v21 }
 0x137   :  { %295 = vmatprep.subr.bf16.mxu1 %v271_v24 }
 0x138   :  { %296 = vmatpush1.bf16.msra.mxu1 %v270_v26 }
 0x139   :  { %1268 = vmatprep.subr.bf16.mxu1 %v1427_v25 }
 0x13b   :  { %1226 = vmatmul.mubr.msk.bf16.vlgmr.msra.gmra.mxu1 %vm277_vm0, %v1763_v27 }
 0x13c   :  { %1269 = vmatpush3.bf16.msra.mxu1 %v1428_v28 }
 0x13d   :  { %1270 = vmatprep.subr.bf16.mxu1 %v1429_v29 }
 0x140   :  { %1271 = vmatpush3.bf16.msra.mxu1 %v1430_v30 }
 0x141   :  { %1272 = vmatprep.subr.bf16.mxu1 %v1431_v31 }
 0x144   :  { %1273 = vmatpush3.bf16.msra.mxu1 %v1432_v32 }
 0x145   :  { %1274 = vmatprep.subr.bf16.mxu1 %v1433_v33 }
 0x148   :  { %1275 = vmatpush3.bf16.msra.mxu1 %v1434_v34 }
 0x149   :  { %1276 = vmatprep.subr.bf16.mxu1 %v1435_v35  ;;  %v1443_v35 = vld [vmem:[#allocation10 + $0x38] sm:$0xff]  }
 0x14c   :  { %1277 = vmatpush3.bf16.msra.mxu1 %v1436_v36 }
 0x14d   :  { %1278 = vmatprep.subr.bf16.mxu1 %v1437_v37 }
 0x150   :  { %1279 = vmatpush3.bf16.msra.mxu1 %v1438_v38 }
 0x151   :  { %1280 = vmatprep.subr.bf16.mxu1 %v1439_v39 }
 0x154   :  { %1281 = vmatpush3.bf16.msra.mxu1 %v1440_v40 }
 0x155   :  { %1282 = vmatprep.subr.bf16.mxu1 %v1441_v41 }
 0x158   :  { %1283 = vmatpush3.bf16.msra.mxu1 %v1442_v42 }
 0x159   :  { %1324 = vmatprep.subr.mxu1 %v1654_v57 }
 0x1fb   :  { %v315_v43 = vpop.f32.mrf.mxu1 }
 0x1fc   :  { %v328_v48 = vmul.f32 0.2, %v315_v43  ;;  %vm324_vm3 = vcmp.gt.f32.partialorder %v315_v43, 0.0 }
 0x1fd   :  { %v317_v44 = vpop.f32.mrf.mxu1 }
 0x1fe   :  { %v329_v46 = vmul.f32 0.2, %v317_v44  ;;  %vm325_vm2 = vcmp.gt.f32.partialorder %v317_v44, 0.0  ;;  %v332_v54 = vsel %vm324_vm3, %v315_v43, %v328_v48  ;;  %v1444_v43 = vld [vmem:[#allocation10 + $0x30] sm:$0xff]  }
 0x1ff   :  { %v319_v45 = vpop.f32.mrf.mxu1  ;;  %v1450_v48 = vld [vmem:[#allocation11 + $0x30] sm:$0xff]  }
 0x200   :  { %vm326_vm1 = vcmp.gt.f32.partialorder %v319_v45, 0.0  ;;  %v330_v47 = vmul.f32 0.2, %v319_v45  ;;  %v333_v52 = vsel %vm325_vm2, %v317_v44, %v329_v46  ;;  %v1446_v44 = vld [vmem:[#allocation10 + $0x20] sm:$0xff]   ;;  %v1448_v46 = vld [vmem:[#allocation11 + $0x38] sm:$0xff]  }
 0x201   :  { %v321_v49 = vpop.f32.mrf.mxu1 }
 0x202   :  { %vm327_vm4 = vcmp.gt.f32.partialorder %v321_v49, 0.0  ;;  %v331_v50 = vmul.f32 0.2, %v321_v49  ;;  %v334_v51 = vsel %vm326_vm1, %v319_v45, %v330_v47  ;;  %v1447_v45 = vld [vmem:[#allocation10 + $0x18] sm:$0xff]   ;;  %v1449_v47 = vld [vmem:[#allocation10 + $0x10] sm:$0xff]  }
 0x203   :  { %v336_v56 = vpack.c.bf16 %v334_v51, %v332_v54  ;;  %v1453_v51 = vld [vmem:[#allocation10] sm:$0xff]   ;;  %v1456_v54 = vld [vmem:[#allocation11 + $0x10] sm:$0xff]  }
 0x204   :  { %v335_v53 = vsel %vm327_vm4, %v321_v49, %v331_v50  ;;  %v1451_v49 = vld [vmem:[#allocation10 + $0x8] sm:$0xff]  }
 0x205   :  { %v337_v55 = vpack.c.bf16 %v335_v53, %v333_v52  ;;  %v1452_v50 = vld [vmem:[#allocation11 + $0x28] sm:$0xff]   ;;  %v1454_v52 = vld [vmem:[#allocation11 + $0x20] sm:$0xff]   ;;  %v1455_v53 = vld [vmem:[#allocation11 + $0x18] sm:$0xff]  }
 0x207   :  { %498 = vmatprep.mubr.bf16.mxu1 %v337_v55  ;;  %v1457_v55 = vld [vmem:[#allocation11 + $0x8] sm:$0xff]  }
 0x208   :  { %499 = vmatmul.mubr.bf16.vlgmr.msra.gmra.mxu1 %v336_v56  ;;  %v1458_v56 = vld [vmem:[#allocation11] sm:$0xff]  }
 0x209   :  { %1326 = vmatprep.mubr.msk.f32.mxu1 %vm1655_vm5, %v1654_v57 }
 0x2c8   :  { %v1284_v58 = vpop.f32.mrf.mxu1 }
 0x2ca   :  { %v1285_v59 = vpop.f32.mrf.mxu1 }
 0x2cb   :  { %v1286_v62 = vadd.f32 %v1285_v59, %v1284_v58 }
 0x2cc   :  { %v1287_v60 = vpop.f32.mrf.mxu1 }
 0x2ce   :  { %v1288_v61 = vpop.f32.mrf.mxu1 }
 0x2cf   :  { %v1289_v63 = vadd.f32 %v1288_v61, %v1287_v60 }
 0x2d1   :  { %v507_v0 = vpack.c.bf16 %v1289_v63, %v1286_v62 }
 0x2d3   :  { %1319 = vmatpush3.bf16.msra.mxu0 %v507_v0 }
 0x2d4   :  { %1329 = vmatprep.subr.mxu0 %v1654_v57 }
 0x2d6   :  { %1321 = vmatmul.mubr.msk.bf16.vlgmr.msra.gmra.mxu0 %vm277_vm0, %v1763_v27 }
 0x2d7   :  { %1331 = vmatprep.mubr.msk.f32.mxu0 %vm1655_vm5, %v1654_v57 }
 0x396   :  { %v542_v1 = vpop.f32.mrf.mxu0 }
 0x397   :  { %1325 = vmatpush3.xpose.msra.mxu1 %v542_v1  ;;  %v1246_v1 = vld [vmem:[%s1841_s4] ss:$0 sm:$0xff] }
 0x398   :  { %v1322_v2 = vpop.f32.mrf.mxu0  ;;  %1334 = vmatprep.subr.mxu1 %v1654_v57 }
 0x39a   :  { %v545_v3 = vpop.f32.mrf.mxu0  ;;  %1327 = vmatmul.mubr.f32.vlgmr.msra.gmra.mxu1 %v1757_v17 }
 0x39b   :  { %1330 = vmatpush3.xpose.msra.mxu0 %v545_v3  ;;  %1335 = vmatpush3.msra.mxu1 %v1757_v17  ;;  %v1247_v3 = vld [vmem:[%s1842_s5] ss:$0 sm:$0xff] }
 0x39c   :  { %v1323_v4 = vpop.f32.mrf.mxu0  ;;  %1336 = vmatprep.mubr.msk.f32.mxu1 %vm1655_vm5, %v1654_v57  ;;  %1339 = vmatprep.subr.mxu0 %v1654_v57 }
 0x39d   :  { %1344 = vmatprep.subr.bf16.mxu1 %v1654_v57 }
 0x39e   :  { %1332 = vmatmul.mubr.f32.vlgmr.msra.gmra.mxu0 %v1759_v18 }
 0x39f   :  { %1340 = vmatpush3.msra.mxu0 %v1759_v18  ;;  %1341 = vmatprep.mubr.msk.f32.mxu0 %vm1655_vm5, %v1654_v57 }
 0x3a0   :  { %1364 = vmatprep.subr.bf16.mxu0 %v1654_v57 }
 0x45a   :  { %v615_v5 = vpop.f32.mrf.mxu1 }
 0x45b   :  { %v690_v6 = vsel %vm689_vm6, %v615_v5, -inf }
 0x45c   :  { %691 = vmax.xlane.f32.xlu0 %v690_v6  ;;  %v1328_v7 = vpop.f32.mrf.mxu1 }
 0x45e   :  { %v685_v8 = vpop.f32.mrf.mxu0 }
 0x45f   :  { %v693_v9 = vsel %vm689_vm6, %v685_v8, -inf }
 0x460   :  { %694 = vmax.xlane.f32.xlu0 %v693_v9  ;;  %v1333_v10 = vpop.f32.mrf.mxu0 }
 0x4e5   :  { %v692_v11 = vpop.xlane.xlu0 %691 }
 0x4e6   :  { %v696_v12 = vsub.f32 %v615_v5, %v692_v11 }
 0x4e8   :  { %v698_v13 = vmul.f32 1.442695, %v696_v12 }
 0x4e9   :  { %v695_v14 = vpop.xlane.xlu0 %694 }
 0x4ea   :  { %1459 = vpow2.f32 %v698_v13  ;;  %v697_v15 = vsub.f32 %v685_v8, %v695_v14 }
 0x4ec   :  { %v700_v16 = vmul.f32 1.442695, %v697_v15 }
 0x4ee   :  { %1461 = vpow2.f32 %v700_v16 }
 0x4f7   :  { %v1460_v19 = vpop.eup %1459 }
 0x4f8   :  { %v702_v20 = vsel %vm689_vm6, %v1460_v19, 0.0 }
 0x4f9   :  { %703 = vadd.xlane.f32.xlu1 %v702_v20 }
 0x4fb   :  { %v1462_v21 = vpop.eup %1461 }
 0x4fc   :  { %v705_v22 = vsel %vm689_vm6, %v1462_v21, 0.0 }
 0x4fd   :  { %706 = vadd.xlane.f32.xlu1 %v705_v22 }
 0x582   :  { %v704_v23 = vpop.xlane.xlu1 %703 }
 0x583   :  { %1463 = vrcp.f32 %v704_v23 }
 0x586   :  { %v707_v24 = vpop.xlane.xlu1 %706 }
 0x587   :  { %1465 = vrcp.f32 %v707_v24 }
 0x590   :  { %v1464_v25 = vpop.eup %1463 }
 0x591   :  { %v710_v26 = vmul.f32 %v1464_v25, %v1460_v19 }
 0x593   :  { %1337 = vmatmul.mubr.msk.f32.vlgmr.msra.gmra.mxu1 %vm689_vm6, %v710_v26 }
 0x594   :  { %v1466_v27 = vpop.eup %1465  ;;  %1360 = vmatprep.mubr.msk.bf16.mxu1 %vm1655_vm5, %v1654_v57  ;;  %1345 = vmatpush3.bf16.msra.mxu1 %v1443_v35 }
 0x595   :  { %v711_v28 = vmul.f32 %v1466_v27, %v1462_v21  ;;  %1346 = vmatprep.subr.bf16.mxu1 %v1654_v57 }
 0x597   :  { %1342 = vmatmul.mubr.msk.f32.vlgmr.msra.gmra.mxu0 %vm689_vm6, %v711_v28 }
 0x598   :  { %1380 = vmatprep.mubr.msk.bf16.mxu0 %vm1655_vm5, %v1654_v57  ;;  %1347 = vmatpush3.bf16.msra.mxu1 %v1444_v43 }
 0x599   :  { %1348 = vmatprep.subr.bf16.mxu1 %v1654_v57  ;;  %1365 = vmatpush3.bf16.msra.mxu0 %v1448_v46 }
 0x59a   :  { %1366 = vmatprep.subr.bf16.mxu0 %v1654_v57 }
 0x59d   :  { %1367 = vmatpush3.bf16.msra.mxu0 %v1450_v48 }
 0x59e   :  { %1368 = vmatprep.subr.bf16.mxu0 %v1654_v57 }
 0x5a1   :  { %1369 = vmatpush3.bf16.msra.mxu0 %v1452_v50 }
 0x5a2   :  { %1370 = vmatprep.subr.bf16.mxu0 %v1654_v57 }
 0x5a5   :  { %1371 = vmatpush3.bf16.msra.mxu0 %v1454_v52 }
 0x5a6   :  { %1372 = vmatprep.subr.bf16.mxu0 %v1654_v57 }
 0x5a9   :  { %1373 = vmatpush3.bf16.msra.mxu0 %v1455_v53 }
 0x5aa   :  { %1374 = vmatprep.subr.bf16.mxu0 %v1654_v57 }
 0x5ad   :  { %1375 = vmatpush3.bf16.msra.mxu0 %v1456_v54 }
 0x5ae   :  { %1376 = vmatprep.subr.bf16.mxu0 %v1654_v57 }
 0x5b1   :  { %1377 = vmatpush3.bf16.msra.mxu0 %v1457_v55 }
 0x5b2   :  { %1378 = vmatprep.subr.bf16.mxu0 %v1654_v57 }
 0x5b5   :  { %1379 = vmatpush3.bf16.msra.mxu0 %v1458_v56 }
 0x653   :  { %v781_v29 = vpop.f32.mrf.mxu1 }
 0x654   :  { %v782_v30 = vadd.f32 %v781_v29, %v1757_v17 }
 0x655   :  { %v1338_v31 = vpop.f32.mrf.mxu1 }
 0x656   :  { %858 = vadd.xlane.f32.xlu0 %v782_v30 }
 0x657   :  { %v854_v32 = vpop.f32.mrf.mxu0 }
 0x658   :  { %v855_v33 = vadd.f32 %v854_v32, %v1759_v18  ;;  %v1445_v18 = vld [vmem:[#allocation10 + $0x28] sm:$0xff]  }
 0x659   :  { %v1343_v34 = vpop.f32.mrf.mxu0  ;;  %1349 = vmatpush3.bf16.msra.mxu1 %v1445_v18  ;;  %v1248_v32 = vld [vmem:[%s1844_s7] ss:$0 sm:$0xff] }
 0x65a   :  { %860 = vadd.xlane.f32.xlu1 %v855_v33  ;;  %1350 = vmatprep.subr.bf16.mxu1 %v1654_v57 }
 0x65d   :  { %1351 = vmatpush3.bf16.msra.mxu1 %v1446_v44 }
 0x65e   :  { %1352 = vmatprep.subr.bf16.mxu1 %v1654_v57 }
 0x661   :  { %1353 = vmatpush3.bf16.msra.mxu1 %v1447_v45 }
 0x662   :  { %1354 = vmatprep.subr.bf16.mxu1 %v1654_v57 }
 0x665   :  { %1355 = vmatpush3.bf16.msra.mxu1 %v1449_v47 }
 0x666   :  { %1356 = vmatprep.subr.bf16.mxu1 %v1654_v57 }
 0x669   :  { %1357 = vmatpush3.bf16.msra.mxu1 %v1451_v49 }
 0x66a   :  { %1358 = vmatprep.subr.bf16.mxu1 %v1654_v57 }
 0x66d   :  { %1359 = vmatpush3.bf16.msra.mxu1 %v1453_v51 }
 0x6df   :  { %v859_v36 = vpop.xlane.xlu0 %858 }
 0x6e0   :  { %v863_v37 = vmul.f32 0.0078125, %v859_v36 }
 0x6e2   :  { %v865_v38 = vsub.f32 %v782_v30, %v863_v37 }
 0x6e3   :  { %v861_v39 = vpop.xlane.xlu1 %860 }
 0x6e4   :  { %v864_v40 = vmul.f32 0.0078125, %v861_v39  ;;  %v867_v41 = vmul.f32 %v865_v38, %v865_v38 }
 0x6e6   :  { %v866_v42 = vsub.f32 %v855_v33, %v864_v40  ;;  %869 = vadd.xlane.f32.xlu0 %v867_v41 }
 0x6e8   :  { %v868_v17 = vmul.f32 %v866_v42, %v866_v42 }
 0x6ea   :  { %871 = vadd.xlane.f32.xlu1 %v868_v17 }
 0x76f   :  { %v870_v58 = vpop.xlane.xlu0 %869 }
 0x770   :  { %v873_v59 = vmul.f32 0.0078125, %v870_v58 }
 0x772   :  { %v875_v60 = vadd.f32 1e-05, %v873_v59 }
 0x773   :  { %v872_v61 = vpop.xlane.xlu1 %871 }
 0x774   :  { %1467 = vrsqrt.f32 %v875_v60  ;;  %v874_v62 = vmul.f32 0.0078125, %v872_v61 }
 0x776   :  { %v876_v63 = vadd.f32 1e-05, %v874_v62 }
 0x778   :  { %1469 = vrsqrt.f32 %v876_v63 }
 0x781   :  { %v1468_v0 = vpop.eup %1467 }
 0x782   :  { %v879_v2 = vmul.f32 %v1468_v0, %v865_v38 }
 0x784   :  { %v887_v57 = vmul.f32 %v1246_v1, %v879_v2 }
 0x785   :  { %v1470_v4 = vpop.eup %1469 }
 0x786   :  { %v880_v5 = vmul.f32 %v1470_v4, %v866_v42  ;;  %v895_v6 = vadd.f32 %v1247_v3, %v887_v57 }
 0x788   :  { %v888_v7 = vmul.f32 %v1246_v1, %v880_v5  ;;  %v1011_v8 = vrot.slane %v895_v6, 4 }
 0x78a   :  { %v896_v9 = vadd.f32 %v1247_v3, %v888_v7  ;;  %v1012_v10 = vadd.f32 %v1011_v8, %v895_v6 }
 0x78c   :  { %v897_v11 = vpack.c.bf16 %v896_v9, %v895_v6  ;;  %v1017_v12 = vrot.slane %v896_v9, 4  ;;  %v1013_v13 = vrot.slane %v1012_v10, 2 }
 0x78e   :  { %1361 = vmatmul.mubr.bf16.vlgmr.msra.gmra.mxu1 %v897_v11  ;;  %v1018_v14 = vadd.f32 %v1017_v12, %v896_v9  ;;  %v1014_v15 = vadd.f32 %v1013_v13, %v1012_v10 }
 0x790   :  { %v1015_v16 = vrot.slane %v1014_v15, 1  ;;  %v1019_v19 = vrot.slane %v1018_v14, 2 }
 0x792   :  { %v1016_v20 = vadd.f32 %v1015_v16, %v1014_v15  ;;  %v1020_v21 = vadd.f32 %v1019_v19, %v1018_v14 }
 0x794   :  { %v1021_v22 = vrot.slane %v1020_v21, 1  ;;  %v1024_v23 = vmul.f32 0.125, %v1016_v20 }
 0x796   :  { %v1022_v24 = vadd.f32 %v1021_v22, %v1020_v21  ;;  %v1026_v26 = vpack.c.bf16 %v1024_v23, %v1024_v23 }
 0x798   :  { %v1025_v25 = vmul.f32 0.125, %v1022_v24  ;;  %v1052_v28 = vunpack.c.l.b16 %v1026_v26 }
 0x79a   :  { %v1027_v27 = vpack.c.bf16 %v1025_v25, %v1025_v25 }
 0x79c   :  { %v1053_v29 = vunpack.c.l.b16 %v1027_v27 }
 0x79e   :  { %v1055_v30 = vsel %vm1054_vm7, %v1053_v29, %v1052_v28 }
 0x79f   :  { %v1056_v31 = vpack.c.b16 %v1055_v30, %v1055_v30 }
 0x7a1   :  { %1381 = vmatmul.mubr.bf16.vlgmr.msra.gmra.mxu0 %v1056_v31 }
 0x84e   :  { %v1002_v33 = vpop.f32.mrf.mxu1 }
 0x84f   :  { %v1003_v34 = vadd.f32 %v1248_v32, %v1002_v33 }
 0x850   :  { %v1362_v35 = vpop.f32.mrf.mxu1 }
 0x851   :  { %1009 = vst [vmem:[#allocation13] sm:$0xff] %v1003_v34 }
 0x852   :  { %v1005_v36 = vpop.f32.mrf.mxu1 }
 0x853   :  { %v1006_v37 = vadd.f32 %v1248_v32, %v1005_v36 }
 0x854   :  { %v1363_v38 = vpop.f32.mrf.mxu1 }
 0x855   :  { %1010 = vst [vmem:[#allocation13 + $0x8] sm:$0xff] %v1006_v37 }
 0x856   :  { %1602 = shalt.err (!%p1599_p6)
}
 0x857   :  { %1184 = dma.vmem_to_hbm [thread:$0]  %s1179_s1, 256, %s1847_s10, [#allocation4], %s1648_s12, %s1648_s12, %s1649_s13   ;;  %v1657_v39 = vmov 1966171168   ;;  %v1150_v41 = vlaneseq }
 0x858   :  { %v1148_v40 = vunpack.c.l.s4 %v1657_v39  ;;  %v1257_v43 = vld [vmem:[%s1846_s9] ss:$0 sm:$0xff]  ;;  %s1658_s3 = smov [#allocation14]  }
 0x859   :  { %v1151_v17 = vshrl.u32 %v1150_v41, 7  ;;  %s1190_s18 = sshll.u32 %s1658_s3, 4  ;;  %s1191_s18 = int_to_ptr.vmem [resolvable:$true] %s1190_s18 }
 0x85a   :  { %v1149_v42 = vunpack.c.0.s8 %v1148_v40  ;;  %s1611_s10 = scalar_lea.vmem %s1191_s18, 32  ;;  %p1616_p8 = scmp.lt.s32.totalorder %s1191_s18, %s1191_s18 }
 0x85b   :  { %p1612_p7 = scmp.ne.s32.totalorder %s1191_s18, %s1611_s10  ;;  %p1617_p9 = scmp.lt.s32.totalorder %s1611_s10, %s1611_s10 }
 0x85c   :  { %v1152_v18 = vsub.s32 %v1149_v42, %v1151_v17 }
 0x85d   :  { %p1618_p10 = por %p1617_p9, %p1616_p8 }
 0x85f   :  { %p1619_p11 = pnand %p1618_p10, %p1612_p7 }
 0x861   :  { %v1140_v44 = vpop.f32.mrf.mxu0 }
 0x862   :  { %v1141_v45 = vadd.f32 %v1257_v43, %v1140_v44 }
 0x863   :  { %v1382_v46 = vpop.f32.mrf.mxu0 }
 0x864   :  { %v1153_v47 = vrot.slane %v1141_v45, %v1152_v18 }
 0x865   :  { %v1143_v48 = vpop.f32.mrf.mxu0 }
 0x866   :  { %v1154_v49 = vcombine.high %v1153_v47, %v1153_v47  ;;  %1266 = vst.sshfl [vmem:[#allocation14] sm:$0x1 pattern:$0x73625140] %v1153_v47 }
 0x867   :  { %v1383_v50 = vpop.f32.mrf.mxu0 }
 0x868   :  { %1267 = vst.sshfl [vmem:[#allocation14 + $0x1] sm:$0x1 pattern:$0x73625140] %v1154_v49 }
 0x869   :  { %1622 = shalt.err (!%p1619_p11)
}
 0x86a   :  { %s1659_s9 = smov 16   ;;  %s1660_s12 = smov 1  }
 0x86b   :  { %1196 = dma.vmem_to_hbm [thread:$0]  %s1191_s18, 32, %s1848_s11, [#allocation15], %s1659_s9, %s1659_s9, %s1660_s12  }
 0x86c   :  { %1639 = dma.done.wait [#allocation4], 256  }
 0x86d   :  { %1640 = vsyncadd [#allocation4], 4294967040 }
 0x86e   :  { %1641 = dma.done.wait [#allocation15], 32  }
 0x86f   :  { %1642 = vsyncadd [#allocation15], 4294967264 }
 0x870   :  { %1203 = vsyncpa [#allocation3], 1 }
 0x871   :  { %1204 = vsyncpa [#allocation6], 1 }
 0x872   :  { %1205 = vsyncpa [#allocation9], 1 }
 0x873   :  { %1206 = vsyncpa [#allocation12], 1 }
 0x874   :  { %1207 = vsyncpa [#allocation4], 1 }
 0x875   :  { %1208 = vsyncpa [#allocation15], 1 }

</bundles_post_ra>
